<compile_context>
chip_gen: v7x
topology: tpu7x:2x2x1
jax: 0.10.0
libtpu: 0.0.40
codegen_flags: <defaults>
</compile_context>

<pallas_src>
import jax
import jax.numpy as jnp
from jax.experimental import pallas as pl
from jax.experimental.pallas import tpu as pltpu


def color_guider_kernel(x_ref, ref_avg_ref, wc1t_ref, bc1_ref, wc2_ref,
                        bc2_ref, out_ref):
    # x_ref:       (B, C, T)   bottleneck features (channels=sublanes, pixels=lanes)
    # ref_avg_ref: (C, B)      hoisted ref-MLP average, one column per batch elem
    # wc1t_ref:    (c8, C)     attention conv1 weight (pre-transposed)
    # bc1_ref:     (c8, 1)     attention conv1 bias
    # wc2_ref:     (c8, 1)     attention conv2 weight (single output channel)
    # bc2_ref:     (1,) SMEM   attention conv2 bias (scalar)
    wc1t = wc1t_ref[...]
    bc1 = bc1_ref[...]
    wc2 = wc2_ref[...]
    bc2 = bc2_ref[0]

    n_batch = x_ref.shape[0]  # static and small -> unrolled Python loop
    for b in range(n_batch):
        xb = x_ref[b]                                                   # (C, T)
        # 1x1 conv #1: (c8, C) @ (C, T) on the MXU.
        a = jnp.dot(wc1t, xb, preferred_element_type=jnp.float32) + bc1
        a = jnp.maximum(a, 0.0)                                         # (c8, T)
        # 1x1 conv #2 has one output channel: VPU multiply + sublane reduce
        # instead of an N=1 MXU matmul (MXU column utilisation would be 1/256).
        logits = jnp.sum(a * wc2, axis=0, keepdims=True) + bc2          # (1, T)
        mask = jax.nn.sigmoid(logits)                                   # (1, T)
        rav = ref_avg_ref[:, b:b + 1]                                   # (C, 1)
        out_ref[b] = (xb + rav * mask).astype(out_ref.dtype)


def _pick_tile_hw(hw, n_batch, channels, itemsize, budget_bytes=4 << 20):
    """Largest lane-aligned HW tile that divides HW and fits the block budget."""
    if hw % 128 != 0:
        # Fall back to the full (un-tiled) spatial extent: block == array dim,
        # which is always a legal BlockSpec (stores are lane-masked but tiny).
        return hw
    per_row = n_batch * channels * itemsize
    t = max(128, min(hw, (budget_bytes // per_row) // 128 * 128))
    while hw % t:
        t -= 128
    return t


def color_guider(bottleneck_features, ref_feats, params):
    """bottleneck_features: (B, C, H, W) NCHW; ref_feats: (B, P, ref_dim)."""
    B, C, H, W = bottleneck_features.shape
    HW = H * W
    w1, b1, w2, b2, wc1, bc1, wc2, bc2 = params
    c8 = wc1.shape[1]

    # --- ref_processor MLP hoisted out of the kernel (plain jnp, tiny work).
    h = jnp.maximum(ref_feats @ w1 + b1, 0.0)              # (B, P, hid)
    rp = jnp.maximum(h @ w2 + b2, 0.0)                     # (B, P, C)
    ref_avg_cb = jnp.transpose(jnp.mean(rp, axis=1), (1, 0))   # (C, B)

    # --- NCHW consumed directly as (B, C, HW): pure reshape, no HBM transpose.
    x = bottleneck_features.reshape(B, C, HW)

    # Attention weights pre-arranged for the (C, HW) layout.
    wc1t = jnp.transpose(wc1, (1, 0))        # (c8, C)
    bc1c = bc1.reshape(c8, 1)
    wc2c = wc2.reshape(c8, 1)
    bc2s = bc2.reshape(1)

    T = _pick_tile_hw(HW, B, C, x.dtype.itemsize)
    n_tiles = HW // T

    # Explicit VMEM budget: double-buffered in + out blocks, weights, headroom.
    blk_bytes = B * C * T * x.dtype.itemsize
    vmem_limit = int(min(4 * blk_bytes + (16 << 20), 48 << 20))

    out = pl.pallas_call(
        color_guider_kernel,
        out_shape=jax.ShapeDtypeStruct((B, C, HW), x.dtype),
        grid_spec=pltpu.PrefetchScalarGridSpec(
            num_scalar_prefetch=0,
            grid=(n_tiles,),
            in_specs=[
                pl.BlockSpec((B, C, T), lambda t: (0, 0, t)),    # x tile
                pl.BlockSpec((C, B), lambda t: (0, 0)),          # ref_avg (resident)
                pl.BlockSpec((c8, C), lambda t: (0, 0)),         # wc1^T
                pl.BlockSpec((c8, 1), lambda t: (0, 0)),         # bc1
                pl.BlockSpec((c8, 1), lambda t: (0, 0)),         # wc2 (column)
                pl.BlockSpec(memory_space=pltpu.MemorySpace.SMEM),  # bc2 scalar
            ],
            out_specs=pl.BlockSpec((B, C, T), lambda t: (0, 0, t)),
        ),
        compiler_params=pltpu.CompilerParams(
            dimension_semantics=("parallel",),
            vmem_limit_bytes=vmem_limit),
    )(x, ref_avg_cb, wc1t, bc1c, wc2c, bc2s)

    return out.reshape(B, C, H, W)


def make_params(key, ref_dim, bottleneck_dim, hidden=256):
    """Deterministic synthetic weights (stored already transposed: x @ W)."""
    c8 = bottleneck_dim // 8
    ks = jax.random.split(key, 8)
    s = 0.05
    w1 = s * jax.random.normal(ks[0], (ref_dim, hidden), jnp.float32)
    b1 = s * jax.random.normal(ks[1], (1, hidden), jnp.float32)
    w2 = s * jax.random.normal(ks[2], (hidden, bottleneck_dim), jnp.float32)
    b2 = s * jax.random.normal(ks[3], (1, bottleneck_dim), jnp.float32)
    wc1 = s * jax.random.normal(ks[4], (bottleneck_dim, c8), jnp.float32)
    bc1 = s * jax.random.normal(ks[5], (1, c8), jnp.float32)
    wc2 = s * jax.random.normal(ks[6], (c8, 1), jnp.float32)
    bc2 = s * jax.random.normal(ks[7], (1, 1), jnp.float32)
    return (w1, b1, w2, b2, wc1, bc1, wc2, bc2)


def color_guider_ref(bottleneck_features, ref_feats, params):
    """Pure-JAX reference mirroring the PyTorch forward, for verification."""
    w1, b1, w2, b2, wc1, bc1, wc2, bc2 = params
    h = jnp.maximum(ref_feats @ w1 + b1, 0.0)           # (B, P, hid)
    rp = jnp.maximum(h @ w2 + b2, 0.0)                  # (B, P, C)
    ref_avg = rp.mean(axis=1)                            # (B, C)
    xp = jnp.transpose(bottleneck_features, (0, 2, 3, 1))   # (B, H, W, C)
    a = jnp.maximum(xp @ wc1 + bc1, 0.0)
    mask = jax.nn.sigmoid(a @ wc2 + bc2)                 # (B, H, W, 1)
    guided = xp + ref_avg[:, None, None, :] * mask
    return jnp.transpose(guided, (0, 3, 1, 2))


if __name__ == "__main__":
    # Small shapes consistent with the module's forward.
    B, num_patches = 2, 4
    ref_dim, bottleneck_dim = 128, 256   # bottleneck_dim // 8 == 32
    H = W = 16                           # HW = 256 -> lane-dense (multiple of 128)

    key = jax.random.PRNGKey(0)
    k_x, k_r, k_p = jax.random.split(key, 3)
    bottleneck_features = jax.random.normal(
        k_x, (B, bottleneck_dim, H, W), jnp.float32)
    ref_feats = jax.random.normal(
        k_r, (B, num_patches, ref_dim), jnp.float32)
    params = make_params(k_p, ref_dim, bottleneck_dim)

    out = color_guider(bottleneck_features, ref_feats, params)
    out = jax.block_until_ready(out)

    ref = jax.block_until_ready(
        color_guider_ref(bottleneck_features, ref_feats, params))
    assert out.shape == (B, bottleneck_dim, H, W)
    assert jnp.allclose(out, ref, atol=1e-3, rtol=1e-3)

    print("KERNEL_OK")
</pallas_src>

<mosaic_0001>
module attributes {stable_mosaic.version = 11 : i64} {
  func.func @color_guider_kernel(%arg0: i32, %arg1: memref<2x256x256xf32, #tpu.memory_space<vmem>>, %arg2: memref<256x2xf32, #tpu.memory_space<vmem>>, %arg3: memref<32x256xf32, #tpu.memory_space<vmem>>, %arg4: memref<32x1xf32, #tpu.memory_space<vmem>>, %arg5: memref<32x1xf32, #tpu.memory_space<vmem>>, %arg6: memref<1xf32, #tpu.memory_space<smem>>, %arg7: memref<2x256x256xf32, #tpu.memory_space<vmem>>) attributes {dimension_semantics = [#tpu.dimension_semantics<parallel>], iteration_bounds = array<i64: 1>, scalar_prefetch = 0 : i64, scratch_operands = 0 : i64, tpu.core_type = #tpu.core_type<tc>, window_params = [{transform_indices = @transform_0, window_bounds = array<i64: 2, 256, 256>}, {pipeline_mode = #tpu.pipeline_mode<synchronous>, transform_indices = @transform_1, window_bounds = array<i64: 256, 2>}, {pipeline_mode = #tpu.pipeline_mode<synchronous>, transform_indices = @transform_2, window_bounds = array<i64: 32, 256>}, {pipeline_mode = #tpu.pipeline_mode<synchronous>, transform_indices = @transform_3, window_bounds = array<i64: 32, 1>}, {pipeline_mode = #tpu.pipeline_mode<synchronous>, transform_indices = @transform_4, window_bounds = array<i64: 32, 1>}, {transform_indices = @transform_5, window_bounds = array<i64: 1>}, {transform_indices = @transform_6, window_bounds = array<i64: 2, 256, 256>}]} {
    %c0 = arith.constant 0 : index
    %c0_0 = arith.constant 0 : index
    %0 = vector.load %arg3[%c0, %c0_0] : memref<32x256xf32, #tpu.memory_space<vmem>>, vector<32x256xf32>
    %c0_1 = arith.constant 0 : index
    %c0_2 = arith.constant 0 : index
    %1 = vector.load %arg4[%c0_1, %c0_2] : memref<32x1xf32, #tpu.memory_space<vmem>>, vector<32x1xf32>
    %c0_3 = arith.constant 0 : index
    %c0_4 = arith.constant 0 : index
    %2 = vector.load %arg5[%c0_3, %c0_4] : memref<32x1xf32, #tpu.memory_space<vmem>>, vector<32x1xf32>
    %c0_5 = arith.constant 0 : index
    %3 = memref.load %arg6[%c0_5] : memref<1xf32, #tpu.memory_space<smem>>
    %c0_6 = arith.constant 0 : index
    %c0_7 = arith.constant 0 : index
    %c0_8 = arith.constant 0 : index
    %4 = vector.load %arg1[%c0_6, %c0_7, %c0_8] : memref<2x256x256xf32, #tpu.memory_space<vmem>>, vector<1x256x256xf32>
    %5 = vector.shape_cast %4 : vector<1x256x256xf32> to vector<256x256xf32>
    %cst = arith.constant dense<0.000000e+00> : vector<32x256xf32>
    %6 = tpu.matmul %0, %5, %cst {dimension_numbers = #tpu.dot_dimension_numbers<[1], [0], [0], [1], [0, 0, 1, 1], [], []>} : vector<32x256xf32>, vector<256x256xf32>, vector<32x256xf32> -> vector<32x256xf32>
    %7 = vector.broadcast %1 : vector<32x1xf32> to vector<32x256xf32>
    %8 = arith.addf %6, %7 : vector<32x256xf32>
    %cst_9 = arith.constant 0.000000e+00 : f32
    %9 = vector.broadcast %cst_9 : f32 to vector<32x256xf32>
    %10 = arith.maximumf %8, %9 : vector<32x256xf32>
    %11 = vector.broadcast %2 : vector<32x1xf32> to vector<32x256xf32>
    %12 = arith.mulf %10, %11 : vector<32x256xf32>
    %cst_10 = arith.constant dense<0.000000e+00> : vector<256xf32>
    %13 = vector.multi_reduction <add>, %12, %cst_10 [0] : vector<32x256xf32> to vector<256xf32>
    %14 = vector.shape_cast %13 : vector<256xf32> to vector<1x256xf32>
    %15 = vector.broadcast %3 : f32 to vector<1x256xf32>
    %16 = arith.addf %14, %15 : vector<1x256xf32>
    %17 = arith.negf %16 : vector<1x256xf32>
    %18 = math.exp %17 : vector<1x256xf32>
    %cst_11 = arith.constant 1.000000e+00 : f32
    %19 = vector.broadcast %cst_11 : f32 to vector<1x256xf32>
    %20 = arith.addf %19, %18 : vector<1x256xf32>
    %21 = arith.divf %19, %20 : vector<1x256xf32>
    %c0_12 = arith.constant 0 : index
    %c0_13 = arith.constant 0 : index
    %22 = vector.load %arg2[%c0_12, %c0_13] : memref<256x2xf32, #tpu.memory_space<vmem>>, vector<256x1xf32>
    %23 = vector.broadcast %22 : vector<256x1xf32> to vector<256x256xf32>
    %24 = vector.broadcast %21 : vector<1x256xf32> to vector<256x256xf32>
    %25 = arith.mulf %23, %24 : vector<256x256xf32>
    %26 = arith.addf %5, %25 : vector<256x256xf32>
    %c0_14 = arith.constant 0 : index
    %c0_15 = arith.constant 0 : index
    %c0_16 = arith.constant 0 : index
    %27 = vector.load %arg7[%c0_14, %c0_15, %c0_16] : memref<2x256x256xf32, #tpu.memory_space<vmem>>, vector<1x256x256xf32>
    %28 = vector.shape_cast %27 : vector<1x256x256xf32> to vector<256x256xf32>
    %29 = vector.shape_cast %26 : vector<256x256xf32> to vector<1x256x256xf32>
    tpu.vector_store %arg7[%c0_14, %c0_15, %c0_16], %29 {strides = array<i32>} : memref<2x256x256xf32, #tpu.memory_space<vmem>>, vector<1x256x256xf32>,
    %c1 = arith.constant 1 : index
    %c0_17 = arith.constant 0 : index
    %c0_18 = arith.constant 0 : index
    %30 = vector.load %arg1[%c1, %c0_17, %c0_18] : memref<2x256x256xf32, #tpu.memory_space<vmem>>, vector<1x256x256xf32>
    %31 = vector.shape_cast %30 : vector<1x256x256xf32> to vector<256x256xf32>
    %cst_19 = arith.constant dense<0.000000e+00> : vector<32x256xf32>
    %32 = tpu.matmul %0, %31, %cst_19 {dimension_numbers = #tpu.dot_dimension_numbers<[1], [0], [0], [1], [0, 0, 1, 1], [], []>} : vector<32x256xf32>, vector<256x256xf32>, vector<32x256xf32> -> vector<32x256xf32>
    %33 = vector.broadcast %1 : vector<32x1xf32> to vector<32x256xf32>
    %34 = arith.addf %32, %33 : vector<32x256xf32>
    %cst_20 = arith.constant 0.000000e+00 : f32
    %35 = vector.broadcast %cst_20 : f32 to vector<32x256xf32>
    %36 = arith.maximumf %34, %35 : vector<32x256xf32>
    %37 = vector.broadcast %2 : vector<32x1xf32> to vector<32x256xf32>
    %38 = arith.mulf %36, %37 : vector<32x256xf32>
    %cst_21 = arith.constant dense<0.000000e+00> : vector<256xf32>
    %39 = vector.multi_reduction <add>, %38, %cst_21 [0] : vector<32x256xf32> to vector<256xf32>
    %40 = vector.shape_cast %39 : vector<256xf32> to vector<1x256xf32>
    %41 = vector.broadcast %3 : f32 to vector<1x256xf32>
    %42 = arith.addf %40, %41 : vector<1x256xf32>
    %43 = arith.negf %42 : vector<1x256xf32>
    %44 = math.exp %43 : vector<1x256xf32>
    %cst_22 = arith.constant 1.000000e+00 : f32
    %45 = vector.broadcast %cst_22 : f32 to vector<1x256xf32>
    %46 = arith.addf %45, %44 : vector<1x256xf32>
    %47 = arith.divf %45, %46 : vector<1x256xf32>
    %c0_23 = arith.constant 0 : index
    %c1_24 = arith.constant 1 : index
    %48 = vector.load %arg2[%c0_23, %c1_24] : memref<256x2xf32, #tpu.memory_space<vmem>>, vector<256x1xf32>
    %49 = vector.broadcast %48 : vector<256x1xf32> to vector<256x256xf32>
    %50 = vector.broadcast %47 : vector<1x256xf32> to vector<256x256xf32>
    %51 = arith.mulf %49, %50 : vector<256x256xf32>
    %52 = arith.addf %31, %51 : vector<256x256xf32>
    %c1_25 = arith.constant 1 : index
    %c0_26 = arith.constant 0 : index
    %c0_27 = arith.constant 0 : index
    %53 = vector.load %arg7[%c1_25, %c0_26, %c0_27] : memref<2x256x256xf32, #tpu.memory_space<vmem>>, vector<1x256x256xf32>
    %54 = vector.shape_cast %53 : vector<1x256x256xf32> to vector<256x256xf32>
    %55 = vector.shape_cast %52 : vector<256x256xf32> to vector<1x256x256xf32>
    tpu.vector_store %arg7[%c1_25, %c0_26, %c0_27], %55 {strides = array<i32>} : memref<2x256x256xf32, #tpu.memory_space<vmem>>, vector<1x256x256xf32>,
    return
  }
  func.func @transform_0(%arg0: i32) -> (i32, i32, i32) {
    %c0_i32 = arith.constant 0 : i32
    %c0_i32_0 = arith.constant 0 : i32
    %c0_i32_1 = arith.constant 0 : i32
    return %c0_i32, %c0_i32_0, %arg0 : i32, i32, i32
  }
  func.func @transform_1(%arg0: i32) -> (i32, i32) {
    %c0_i32 = arith.constant 0 : i32
    %c0_i32_0 = arith.constant 0 : i32
    %c0_i32_1 = arith.constant 0 : i32
    return %c0_i32, %c0_i32_0 : i32, i32
  }
  func.func @transform_2(%arg0: i32) -> (i32, i32) {
    %c0_i32 = arith.constant 0 : i32
    %c0_i32_0 = arith.constant 0 : i32
    %c0_i32_1 = arith.constant 0 : i32
    return %c0_i32, %c0_i32_0 : i32, i32
  }
  func.func @transform_3(%arg0: i32) -> (i32, i32) {
    %c0_i32 = arith.constant 0 : i32
    %c0_i32_0 = arith.constant 0 : i32
    %c0_i32_1 = arith.constant 0 : i32
    return %c0_i32, %c0_i32_0 : i32, i32
  }
  func.func @transform_4(%arg0: i32) -> (i32, i32) {
    %c0_i32 = arith.constant 0 : i32
    %c0_i32_0 = arith.constant 0 : i32
    %c0_i32_1 = arith.constant 0 : i32
    return %c0_i32, %c0_i32_0 : i32, i32
  }
  func.func @transform_5(%arg0: i32) -> i32 {
    %c0_i32 = arith.constant 0 : i32
    %c0_i32_0 = arith.constant 0 : i32
    return %c0_i32 : i32
  }
  func.func @transform_6(%arg0: i32) -> (i32, i32, i32) {
    %c0_i32 = arith.constant 0 : i32
    %c0_i32_0 = arith.constant 0 : i32
    %c0_i32_1 = arith.constant 0 : i32
    return %c0_i32, %c0_i32_0, %arg0 : i32, i32, i32
  }
}

</mosaic_0001>

<bundles_post_ra>
// kernel: tpu_custom_call.1
= control target key start
LH: loop header
LB: loop body
LE: loop exit
PB: predicated region body
PF: predicated region fallthrough
CT: control target
= control target key end

     0   :  { %12 = vsyncpa [#allocation4], 0  ;;  %s2669_s0 = inlined_call_operand.hbm [shape: f32[2,256,256], index: 0, kind: input, shape index: {}]   ;;  %s2670_s1 = inlined_call_operand.vmem [shape: f32[256,2], index: 1, kind: input, shape index: {}]   ;;  %s2671_s2 = inlined_call_operand.vmem [shape: f32[32,256], index: 2, kind: input, shape index: {}]   ;;  %s2672_s3 = inlined_call_operand.vmem [shape: f32[32,1], index: 3, kind: input, shape index: {}]   ;;  %s2673_s4 = inlined_call_operand.vmem [shape: f32[32,1], index: 4, kind: input, shape index: {}]   ;;  %s2674_s5 = inlined_call_operand.<no memory space> [shape: f32[1], index: 5, kind: input, shape index: {}]   ;;  %s2675_s6 = inlined_call_operand.hbm [shape: f32[2,256,256], index: 6, kind: output, shape index: {}]  }
   0x1   :  { %13 = vsyncpa [#allocation5], 0  ;;  %s1600_s21 = smov [#allocation3]   ;;  %s1552_s25 = scalar_lea.hbm %s2669_s0, 16384 }
   0x2   :  { %s19_s22 = sshll.u32 %s1600_s21, 4  ;;  %p1553_p0 = scmp.ne.s32.totalorder %s2669_s0, %s1552_s25  ;;  %s20_s22 = int_to_ptr.vmem [resolvable:$true] %s19_s22 }
   0x3   :  { %p1556_p1 = scmp.lt.u32.totalorder %s1552_s25, %s2669_s0 }
   0x5   :  { %p1558_p2 = pnand %p1556_p1, %p1553_p0 }
   0x7   :  { %1561 = shalt.err (!%p1558_p2)
}
   0x8   :  { %s1562_s30 = scalar_lea.vmem %s20_s22, 16384  ;;  %p1567_p4 = scmp.lt.s32.totalorder %s20_s22, %s20_s22 }
   0x9   :  { %p1563_p3 = scmp.ne.s32.totalorder %s20_s22, %s1562_s30  ;;  %p1568_p5 = scmp.lt.s32.totalorder %s1562_s30, %s1562_s30 }
   0xb   :  { %p1569_p6 = por %p1568_p5, %p1567_p4 }
   0xd   :  { %p1570_p7 = pnand %p1569_p6, %p1563_p3 }
   0xf   :  { %1573 = shalt.err (!%p1570_p7)
}
  0x10   :  { %s1601_s7 = smov 256   ;;  %s1602_s8 = smov 16  }
  0x11   :  { %25 = dma.hbm_to_vmem [thread:$0]  %s2669_s0, 16384, %s20_s22, [#allocation4], %s1601_s7, %s1601_s7, %s1602_s8  }
  0x12   :  { %1596 = dma.done.wait [#allocation4], 16384  }
  0x13   :  { %1597 = vsyncadd [#allocation4], 4294950912  ;;  %v1603_v0 = vmov 0   ;;  %v49_v1 = vld [vmem:[%s2672_s3 + $0x10] sm:$0xff]  ;;  %v47_v2 = vld [vmem:[%s2672_s3] sm:$0xff] }
  0x14   :  { %1425 = vset.pattern.permute.xlu1 %v1603_v0  ;;  %1424 = vset.pattern.permute.xlu0 %v1603_v0  ;;  %v57_v3 = vld [vmem:[#allocation3 + $0x8] sm:$0xff]  ;;  %v59_v4 = vld [vmem:[#allocation3 + $0x18] sm:$0xff]  ;;  %v56_v9 = vld [vmem:[#allocation3] sm:$0xff] }
  0x15   :  { %132 = vperm.xlu1 %1425, %v49_v1   ;;  %122 = vperm.xlu0 %1424, %v47_v2   ;;  %v684_v5 = vld [vmem:[#allocation3 + $0x208] sm:$0xff]  ;;  %v686_v6 = vld [vmem:[#allocation3 + $0x218] sm:$0xff]  ;;  %v1290_v7 = vpack.c.bf16 %v59_v4, %v57_v3  ;;  %v58_v10 = vld [vmem:[#allocation3 + $0x10] sm:$0xff] }
  0x16   :  { %v1354_v8 = vpack.c.bf16 %v686_v6, %v684_v5  ;;  %v683_v11 = vld [vmem:[#allocation3 + $0x200] sm:$0xff]  ;;  %v1292_v12 = vpack.c.bf16 %v58_v10, %v56_v9  ;;  %v685_v13 = vld [vmem:[#allocation3 + $0x210] sm:$0xff]  ;;  %v50_v14 = vld [vmem:[%s2672_s3 + $0x18] sm:$0xff] }
  0x17   :  { %v48_v15 = vld [vmem:[%s2672_s3 + $0x8] sm:$0xff]  ;;  %1291 = vmatprep.subr.bf16.mxu0 %v1290_v7  ;;  %v1356_v16 = vpack.c.bf16 %v685_v13, %v683_v11  ;;  %v63_v18 = vld [vmem:[#allocation3 + $0x38] sm:$0xff]  ;;  %v60_v22 = vld [vmem:[#allocation3 + $0x20] sm:$0xff] }
  0x18   :  { %1355 = vmatprep.subr.bf16.mxu1 %v1354_v8  ;;  %v61_v17 = vld [vmem:[#allocation3 + $0x28] sm:$0xff]  ;;  %1293 = vmatpush1.bf16.msra.mxu0 %v1292_v12  ;;  %v690_v21 = vld [vmem:[#allocation3 + $0x238] sm:$0xff]  ;;  %v62_v23 = vld [vmem:[#allocation3 + $0x30] sm:$0xff] }
  0x19   :  { %v688_v19 = vld [vmem:[#allocation3 + $0x228] sm:$0xff]  ;;  %137 = vperm.xlu1 %1425, %v50_v14   ;;  %v1294_v20 = vpack.c.bf16 %v63_v18, %v61_v17  ;;  %1357 = vmatpush1.bf16.msra.mxu1 %v1356_v16  ;;  %v1296_v25 = vpack.c.bf16 %v62_v23, %v60_v22  ;;  %v687_v26 = vld [vmem:[#allocation3 + $0x220] sm:$0xff]  ;;  %v689_v27 = vld [vmem:[#allocation3 + $0x230] sm:$0xff] }
  0x1a   :  { %127 = vperm.xlu0 %1424, %v48_v15   ;;  %v1358_v24 = vpack.c.bf16 %v690_v21, %v688_v19  ;;  %v52_v28 = vld [vmem:[%s2673_s4 + $0x8] sm:$0xff]  ;;  %v1360_v29 = vpack.c.bf16 %v689_v27, %v687_v26  ;;  %v51_v30 = vld [vmem:[%s2673_s4] sm:$0xff]  ;;  %v67_v32 = vld [vmem:[#allocation3 + $0x58] sm:$0xff] }
  0x1b   :  { %1295 = vmatprep.subr.bf16.mxu0 %v1294_v20  ;;  %v65_v31 = vld [vmem:[#allocation3 + $0x48] sm:$0xff]  ;;  %v694_v35 = vld [vmem:[#allocation3 + $0x258] sm:$0xff]  ;;  %v64_v36 = vld [vmem:[#allocation3 + $0x40] sm:$0xff] }
  0x1c   :  { %1359 = vmatprep.subr.bf16.mxu1 %v1358_v24  ;;  %v1298_v33 = vpack.c.bf16 %v67_v32, %v65_v31  ;;  %v692_v34 = vld [vmem:[#allocation3 + $0x248] sm:$0xff]  ;;  %1297 = vmatpush1.bf16.msra.mxu0 %v1296_v25  ;;  %v66_v38 = vld [vmem:[#allocation3 + $0x50] sm:$0xff]  ;;  %v691_v39 = vld [vmem:[#allocation3 + $0x240] sm:$0xff] }
  0x1d   :  { %244 = vperm.xlu1 %1425, %v52_v28   ;;  %v1362_v37 = vpack.c.bf16 %v694_v35, %v692_v34  ;;  %v693_v40 = vld [vmem:[#allocation3 + $0x250] sm:$0xff]  ;;  %1361 = vmatpush1.bf16.msra.mxu1 %v1360_v29  ;;  %v1300_v41 = vpack.c.bf16 %v66_v38, %v64_v36  ;;  %v54_v43 = vld [vmem:[%s2673_s4 + $0x18] sm:$0xff]  ;;  %v69_v45 = vld [vmem:[#allocation3 + $0x68] sm:$0xff] }
  0x1e   :  { %239 = vperm.xlu0 %1424, %v51_v30   ;;  %v1364_v42 = vpack.c.bf16 %v693_v40, %v691_v39  ;;  %v53_v44 = vld [vmem:[%s2673_s4 + $0x10] sm:$0xff]  ;;  %1299 = vmatprep.subr.bf16.mxu0 %v1298_v33  ;;  %v71_v46 = vld [vmem:[#allocation3 + $0x78] sm:$0xff]  ;;  %v696_v47 = vld [vmem:[#allocation3 + $0x268] sm:$0xff] }
  0x1f   :  { %1363 = vmatprep.subr.bf16.mxu1 %v1362_v37  ;;  %v698_v48 = vld [vmem:[#allocation3 + $0x278] sm:$0xff]  ;;  %v1302_v49 = vpack.c.bf16 %v71_v46, %v69_v45  ;;  %v68_v51 = vld [vmem:[#allocation3 + $0x60] sm:$0xff]  ;;  %v70_v52 = vld [vmem:[#allocation3 + $0x70] sm:$0xff] }
  0x20   :  { %v1366_v50 = vpack.c.bf16 %v698_v48, %v696_v47  ;;  %v695_v53 = vld [vmem:[#allocation3 + $0x260] sm:$0xff]  ;;  %1301 = vmatpush1.bf16.msra.mxu0 %v1300_v41  ;;  %v1304_v54 = vpack.c.bf16 %v70_v52, %v68_v51  ;;  %v697_v55 = vld [vmem:[#allocation3 + $0x270] sm:$0xff]  ;;  %v1683_v56 = vld [vmem:[%s2670_s1 + $0x8] sm:$0xff] }
  0x21   :  { %254 = vperm.xlu1 %1425, %v54_v43   ;;  %v1688_v57 = vld [vmem:[%s2670_s1] sm:$0xff]  ;;  %1365 = vmatpush1.bf16.msra.mxu1 %v1364_v42  ;;  %v1368_v58 = vpack.c.bf16 %v697_v55, %v695_v53  ;;  %v73_v59 = vld [vmem:[#allocation3 + $0x88] sm:$0xff]  ;;  %v75_v60 = vld [vmem:[#allocation3 + $0x98] sm:$0xff] }
  0x22   :  { %249 = vperm.xlu0 %1424, %v53_v44   ;;  %v700_v61 = vld [vmem:[#allocation3 + $0x288] sm:$0xff]  ;;  %1303 = vmatprep.subr.bf16.mxu0 %v1302_v49  ;;  %v1306_v62 = vpack.c.bf16 %v75_v60, %v73_v59  ;;  %v702_v63 = vld [vmem:[#allocation3 + $0x298] sm:$0xff]  ;;  %v72_v0 = vld [vmem:[#allocation3 + $0x80] sm:$0xff] }
  0x23   :  { %1367 = vmatprep.subr.bf16.mxu1 %v1366_v50  ;;  %v74_v1 = vld [vmem:[#allocation3 + $0x90] sm:$0xff]  ;;  %v1370_v2 = vpack.c.bf16 %v702_v63, %v700_v61  ;;  %v699_v3 = vld [vmem:[#allocation3 + $0x280] sm:$0xff]  ;;  %v1693_v5 = vld [vmem:[%s2670_s1 + $0x18] sm:$0xff] }
  0x24   :  { %v701_v4 = vld [vmem:[#allocation3 + $0x290] sm:$0xff]  ;;  %1305 = vmatpush1.bf16.msra.mxu0 %v1304_v54  ;;  %v1308_v6 = vpack.c.bf16 %v74_v1, %v72_v0  ;;  %v77_v8 = vld [vmem:[#allocation3 + $0xa8] sm:$0xff]  ;;  %v79_v9 = vld [vmem:[#allocation3 + $0xb8] sm:$0xff] }
  0x25   :  { %337 = vperm.xlu1 %1425, %v1683_v56   ;;  %v1699_v7 = vld [vmem:[%s2670_s1 + $0x10] sm:$0xff]  ;;  %1369 = vmatpush1.bf16.msra.mxu1 %v1368_v58  ;;  %v1372_v10 = vpack.c.bf16 %v701_v4, %v699_v3  ;;  %v704_v11 = vld [vmem:[#allocation3 + $0x2a8] sm:$0xff]  ;;  %v706_v12 = vld [vmem:[#allocation3 + $0x2b8] sm:$0xff]  ;;  %v1310_v14 = vpack.c.bf16 %v79_v9, %v77_v8 }
  0x26   :  { %332 = vperm.xlu0 %1424, %v1688_v57   ;;  %v76_v13 = vld [vmem:[#allocation3 + $0xa0] sm:$0xff]  ;;  %1307 = vmatprep.subr.bf16.mxu0 %v1306_v62  ;;  %v1374_v15 = vpack.c.bf16 %v706_v12, %v704_v11  ;;  %v78_v16 = vld [vmem:[#allocation3 + $0xb0] sm:$0xff]  ;;  %v81_v19 = vld [vmem:[#allocation3 + $0xc8] sm:$0xff] }
  0x27   :  { %1371 = vmatprep.subr.bf16.mxu1 %v1370_v2  ;;  %v703_v17 = vld [vmem:[#allocation3 + $0x2a0] sm:$0xff]  ;;  %v705_v18 = vld [vmem:[#allocation3 + $0x2b0] sm:$0xff]  ;;  %v1312_v20 = vpack.c.bf16 %v78_v16, %v76_v13  ;;  %v83_v21 = vld [vmem:[#allocation3 + $0xd8] sm:$0xff] }
  0x28   :  { %1309 = vmatpush1.bf16.msra.mxu0 %v1308_v6  ;;  %v708_v22 = vld [vmem:[#allocation3 + $0x2c8] sm:$0xff]  ;;  %v710_v23 = vld [vmem:[#allocation3 + $0x2d8] sm:$0xff]  ;;  %v1376_v24 = vpack.c.bf16 %v705_v18, %v703_v17  ;;  %v80_v26 = vld [vmem:[#allocation3 + $0xc0] sm:$0xff]  ;;  %v1314_v29 = vpack.c.bf16 %v83_v21, %v81_v19 }
  0x29   :  { %347 = vperm.xlu1 %1425, %v1693_v5   ;;  %1373 = vmatpush1.bf16.msra.mxu1 %v1372_v10  ;;  %v1707_v25 = vld [vmem:[%s2670_s1 + $0x28] sm:$0xff]  ;;  %v82_v27 = vld [vmem:[#allocation3 + $0xd0] sm:$0xff]  ;;  %v1712_v28 = vld [vmem:[%s2670_s1 + $0x20] sm:$0xff]  ;;  %v1378_v30 = vpack.c.bf16 %v710_v23, %v708_v22 }
  0x2a   :  { %342 = vperm.xlu0 %1424, %v1699_v7   ;;  %1311 = vmatprep.subr.bf16.mxu0 %v1310_v14  ;;  %v707_v31 = vld [vmem:[#allocation3 + $0x2c0] sm:$0xff]  ;;  %v709_v32 = vld [vmem:[#allocation3 + $0x2d0] sm:$0xff]  ;;  %v85_v33 = vld [vmem:[#allocation3 + $0xe8] sm:$0xff]  ;;  %v1316_v36 = vpack.c.bf16 %v82_v27, %v80_v26 }
  0x2b   :  { %1375 = vmatprep.subr.bf16.mxu1 %v1374_v15  ;;  %v87_v34 = vld [vmem:[#allocation3 + $0xf8] sm:$0xff]  ;;  %v712_v35 = vld [vmem:[#allocation3 + $0x2e8] sm:$0xff]  ;;  %v1380_v39 = vpack.c.bf16 %v709_v32, %v707_v31  ;;  %v1724_v40 = vld [vmem:[%s2670_s1 + $0x30] sm:$0xff] }
  0x2c   :  { %1313 = vmatpush1.bf16.msra.mxu0 %v1312_v20  ;;  %v1718_v37 = vld [vmem:[%s2670_s1 + $0x38] sm:$0xff]  ;;  %v1726_v41 = vld [vmem:[#allocation3 + $0xe0] sm:$0xff]  ;;  %v1728_v42 = vld [vmem:[#allocation3 + $0xf0] sm:$0xff]  ;;  %v1318_v43 = vpack.c.bf16 %v87_v34, %v85_v33 }
  0x2d   :  { %357 = vperm.xlu1 %1425, %v1707_v25   ;;  %v714_v38 = vld [vmem:[#allocation3 + $0x2f8] sm:$0xff]  ;;  %1377 = vmatpush1.bf16.msra.mxu1 %v1376_v24  ;;  %2762 = vst [vmem:[#allocation9_spill] sm:$0xff] %v1726_v41  ;;  %2763 = vst [vmem:[#allocation10_spill] sm:$0xff] %v1728_v42  ;;  %v711_v45 = vld [vmem:[#allocation3 + $0x2e0] sm:$0xff]  ;;  %v1320_v51 = vpack.c.bf16 %v1728_v42, %v1726_v41 }
  0x2e   :  { %352 = vperm.xlu0 %1424, %v1712_v28   ;;  %1315 = vmatprep.subr.bf16.mxu0 %v1314_v29  ;;  %v1382_v44 = vpack.c.bf16 %v714_v38, %v712_v35  ;;  %v713_v46 = vld [vmem:[#allocation3 + $0x2f0] sm:$0xff]  ;;  %v89_v47 = vld [vmem:[#allocation3 + $0x108] sm:$0xff]  ;;  %v91_v48 = vld [vmem:[#allocation3 + $0x118] sm:$0xff] }
  0x2f   :  { %1379 = vmatprep.subr.bf16.mxu1 %v1378_v30  ;;  %v716_v49 = vld [vmem:[#allocation3 + $0x308] sm:$0xff]  ;;  %v718_v50 = vld [vmem:[#allocation3 + $0x318] sm:$0xff]  ;;  %v1384_v53 = vpack.c.bf16 %v713_v46, %v711_v45  ;;  %v1742_v54 = vld [vmem:[%s2670_s1 + $0x40] sm:$0xff]  ;;  %v1322_v59 = vpack.c.bf16 %v91_v48, %v89_v47 }
  0x30   :  { %1317 = vmatpush1.bf16.msra.mxu0 %v1316_v36  ;;  %v1736_v52 = vld [vmem:[%s2670_s1 + $0x48] sm:$0xff]  ;;  %v1744_v55 = vld [vmem:[#allocation3 + $0x100] sm:$0xff]  ;;  %v1746_v58 = vld [vmem:[#allocation3 + $0x110] sm:$0xff]  ;;  %v1386_v60 = vpack.c.bf16 %v718_v50, %v716_v49 }
  0x31   :  { %367 = vperm.xlu1 %1425, %v1718_v37   ;;  %1381 = vmatpush1.bf16.msra.mxu1 %v1380_v39  ;;  %2764 = vst [vmem:[#allocation11_spill] sm:$0xff] %v1744_v55  ;;  %2765 = vst [vmem:[#allocation12_spill] sm:$0xff] %v1746_v58  ;;  %v715_v61 = vld [vmem:[#allocation3 + $0x300] sm:$0xff]  ;;  %v717_v62 = vld [vmem:[#allocation3 + $0x310] sm:$0xff]  ;;  %v1324_v3 = vpack.c.bf16 %v1746_v58, %v1744_v55 }
  0x32   :  { %362 = vperm.xlu0 %1424, %v1724_v40   ;;  %1319 = vmatprep.subr.bf16.mxu0 %v1318_v43  ;;  %v93_v63 = vld [vmem:[#allocation3 + $0x128] sm:$0xff]  ;;  %v95_v0 = vld [vmem:[#allocation3 + $0x138] sm:$0xff]  ;;  %v1388_v6 = vpack.c.bf16 %v717_v62, %v715_v61  ;;  %v1760_v8 = vld [vmem:[%s2670_s1 + $0x50] sm:$0xff] }
  0x33   :  { %1383 = vmatprep.subr.bf16.mxu1 %v1382_v44  ;;  %v720_v1 = vld [vmem:[#allocation3 + $0x328] sm:$0xff]  ;;  %v722_v2 = vld [vmem:[#allocation3 + $0x338] sm:$0xff]  ;;  %v1762_v9 = vld [vmem:[#allocation3 + $0x120] sm:$0xff]  ;;  %v1326_v11 = vpack.c.bf16 %v95_v0, %v93_v63 }
  0x34   :  { %1321 = vmatpush1.bf16.msra.mxu0 %v1320_v51  ;;  %v1754_v4 = vld [vmem:[%s2670_s1 + $0x58] sm:$0xff]  ;;  %2766 = vst [vmem:[#allocation13_spill] sm:$0xff] %v1762_v9  ;;  %v1764_v10 = vld [vmem:[#allocation3 + $0x130] sm:$0xff]  ;;  %v1390_v12 = vpack.c.bf16 %v722_v2, %v720_v1  ;;  %v719_v13 = vld [vmem:[#allocation3 + $0x320] sm:$0xff] }
  0x35   :  { %377 = vperm.xlu1 %1425, %v1736_v52   ;;  %1385 = vmatpush1.bf16.msra.mxu1 %v1384_v53  ;;  %2767 = vst [vmem:[#allocation14_spill] sm:$0xff] %v1764_v10  ;;  %v721_v14 = vld [vmem:[#allocation3 + $0x330] sm:$0xff]  ;;  %v97_v15 = vld [vmem:[#allocation3 + $0x148] sm:$0xff]  ;;  %v99_v16 = vld [vmem:[#allocation3 + $0x158] sm:$0xff]  ;;  %v1328_v19 = vpack.c.bf16 %v1764_v10, %v1762_v9 }
  0x36   :  { %372 = vperm.xlu0 %1424, %v1742_v54   ;;  %1323 = vmatprep.subr.bf16.mxu0 %v1322_v59  ;;  %v724_v17 = vld [vmem:[#allocation3 + $0x348] sm:$0xff]  ;;  %v726_v18 = vld [vmem:[#allocation3 + $0x358] sm:$0xff]  ;;  %v1392_v21 = vpack.c.bf16 %v721_v14, %v719_v13  ;;  %v1778_v22 = vld [vmem:[%s2670_s1 + $0x60] sm:$0xff]  ;;  %v1330_v26 = vpack.c.bf16 %v99_v16, %v97_v15 }
  0x37   :  { %1387 = vmatprep.subr.bf16.mxu1 %v1386_v60  ;;  %v1772_v20 = vld [vmem:[%s2670_s1 + $0x68] sm:$0xff]  ;;  %v1780_v23 = vld [vmem:[#allocation3 + $0x140] sm:$0xff]  ;;  %v1782_v24 = vld [vmem:[#allocation3 + $0x150] sm:$0xff]  ;;  %v1394_v27 = vpack.c.bf16 %v726_v18, %v724_v17 }
  0x38   :  { %1325 = vmatpush1.bf16.msra.mxu0 %v1324_v3  ;;  %2768 = vst [vmem:[#allocation15_spill] sm:$0xff] %v1780_v23  ;;  %2769 = vst [vmem:[#allocation16_spill] sm:$0xff] %v1782_v24  ;;  %v723_v29 = vld [vmem:[#allocation3 + $0x340] sm:$0xff]  ;;  %v725_v30 = vld [vmem:[#allocation3 + $0x350] sm:$0xff]  ;;  %v1332_v35 = vpack.c.bf16 %v1782_v24, %v1780_v23 }
  0x39   :  { %387 = vperm.xlu1 %1425, %v1754_v4   ;;  %1389 = vmatpush1.bf16.msra.mxu1 %v1388_v6  ;;  %v101_v31 = vld [vmem:[#allocation3 + $0x168] sm:$0xff]  ;;  %v103_v32 = vld [vmem:[#allocation3 + $0x178] sm:$0xff]  ;;  %v1396_v38 = vpack.c.bf16 %v725_v30, %v723_v29  ;;  %v1796_v39 = vld [vmem:[%s2670_s1 + $0x70] sm:$0xff] }
  0x3a   :  { %382 = vperm.xlu0 %1424, %v1760_v8   ;;  %1327 = vmatprep.subr.bf16.mxu0 %v1326_v11  ;;  %v728_v33 = vld [vmem:[#allocation3 + $0x368] sm:$0xff]  ;;  %v730_v34 = vld [vmem:[#allocation3 + $0x378] sm:$0xff]  ;;  %v1798_v43 = vld [vmem:[#allocation3 + $0x160] sm:$0xff]  ;;  %v1334_v45 = vpack.c.bf16 %v103_v32, %v101_v31 }
  0x3b   :  { %1391 = vmatprep.subr.bf16.mxu1 %v1390_v12  ;;  %v1790_v36 = vld [vmem:[%s2670_s1 + $0x78] sm:$0xff]  ;;  %2770 = vst [vmem:[#allocation17_spill] sm:$0xff] %v1798_v43  ;;  %v1800_v44 = vld [vmem:[#allocation3 + $0x170] sm:$0xff]  ;;  %v1398_v46 = vpack.c.bf16 %v730_v34, %v728_v33  ;;  %v727_v47 = vld [vmem:[#allocation3 + $0x360] sm:$0xff] }
  0x3c   :  { %1329 = vmatpush1.bf16.msra.mxu0 %v1328_v19  ;;  %2771 = vst [vmem:[#allocation18_spill] sm:$0xff] %v1800_v44  ;;  %v729_v48 = vld [vmem:[#allocation3 + $0x370] sm:$0xff]  ;;  %v105_v49 = vld [vmem:[#allocation3 + $0x188] sm:$0xff]  ;;  %v107_v50 = vld [vmem:[#allocation3 + $0x198] sm:$0xff]  ;;  %v1336_v59 = vpack.c.bf16 %v1800_v44, %v1798_v43 }
  0x3d   :  { %397 = vperm.xlu1 %1425, %v1772_v20   ;;  %1393 = vmatpush1.bf16.msra.mxu1 %v1392_v21  ;;  %v732_v51 = vld [vmem:[#allocation3 + $0x388] sm:$0xff]  ;;  %v734_v53 = vld [vmem:[#allocation3 + $0x398] sm:$0xff]  ;;  %v1400_v61 = vpack.c.bf16 %v729_v48, %v727_v47  ;;  %v1814_v62 = vld [vmem:[%s2670_s1 + $0x80] sm:$0xff]  ;;  %v1338_v1 = vpack.c.bf16 %v107_v50, %v105_v49 }
  0x3e   :  { %392 = vperm.xlu0 %1424, %v1778_v22   ;;  %1331 = vmatprep.subr.bf16.mxu0 %v1330_v26  ;;  %v1808_v60 = vld [vmem:[%s2670_s1 + $0x88] sm:$0xff]  ;;  %v1816_v63 = vld [vmem:[#allocation3 + $0x180] sm:$0xff]  ;;  %v1818_v0 = vld [vmem:[#allocation3 + $0x190] sm:$0xff]  ;;  %v1402_v2 = vpack.c.bf16 %v734_v53, %v732_v51 }
  0x3f   :  { %1395 = vmatprep.subr.bf16.mxu1 %v1394_v27  ;;  %2772 = vst [vmem:[#allocation19_spill] sm:$0xff] %v1816_v63  ;;  %2773 = vst [vmem:[#allocation20_spill] sm:$0xff] %v1818_v0  ;;  %v731_v3 = vld [vmem:[#allocation3 + $0x380] sm:$0xff]  ;;  %v733_v6 = vld [vmem:[#allocation3 + $0x390] sm:$0xff]  ;;  %v1340_v15 = vpack.c.bf16 %v1818_v0, %v1816_v63 }
  0x40   :  { %1333 = vmatpush1.bf16.msra.mxu0 %v1332_v35  ;;  %v109_v11 = vld [vmem:[#allocation3 + $0x1a8] sm:$0xff]  ;;  %v111_v12 = vld [vmem:[#allocation3 + $0x1b8] sm:$0xff]  ;;  %v1404_v17 = vpack.c.bf16 %v733_v6, %v731_v3  ;;  %v1832_v18 = vld [vmem:[%s2670_s1 + $0x90] sm:$0xff] }
  0x41   :  { %407 = vperm.xlu1 %1425, %v1790_v36   ;;  %1397 = vmatpush1.bf16.msra.mxu1 %v1396_v38  ;;  %v736_v13 = vld [vmem:[#allocation3 + $0x3a8] sm:$0xff]  ;;  %v738_v14 = vld [vmem:[#allocation3 + $0x3b8] sm:$0xff]  ;;  %v1834_v19 = vld [vmem:[#allocation3 + $0x1a0] sm:$0xff]  ;;  %v1342_v26 = vpack.c.bf16 %v111_v12, %v109_v11 }
  0x42   :  { %402 = vperm.xlu0 %1424, %v1796_v39   ;;  %1335 = vmatprep.subr.bf16.mxu0 %v1334_v45  ;;  %v1826_v16 = vld [vmem:[%s2670_s1 + $0x98] sm:$0xff]  ;;  %2774 = vst [vmem:[#allocation21_spill] sm:$0xff] %v1834_v19  ;;  %v1836_v21 = vld [vmem:[#allocation3 + $0x1b0] sm:$0xff]  ;;  %v1406_v27 = vpack.c.bf16 %v738_v14, %v736_v13  ;;  %v735_v29 = vld [vmem:[#allocation3 + $0x3a0] sm:$0xff] }
  0x43   :  { %1399 = vmatprep.subr.bf16.mxu1 %v1398_v46  ;;  %2775 = vst [vmem:[#allocation22_spill] sm:$0xff] %v1836_v21  ;;  %v737_v30 = vld [vmem:[#allocation3 + $0x3b0] sm:$0xff]  ;;  %v113_v31 = vld [vmem:[#allocation3 + $0x1c8] sm:$0xff]  ;;  %v115_v32 = vld [vmem:[#allocation3 + $0x1d8] sm:$0xff]  ;;  %v1344_v35 = vpack.c.bf16 %v1836_v21, %v1834_v19 }
  0x44   :  { %1337 = vmatpush1.bf16.msra.mxu0 %v1336_v59  ;;  %v740_v33 = vld [vmem:[#allocation3 + $0x3c8] sm:$0xff]  ;;  %v742_v34 = vld [vmem:[#allocation3 + $0x3d8] sm:$0xff]  ;;  %v1849_v45 = vld [vmem:[%s2670_s1 + $0xa0] sm:$0xff]  ;;  %v1408_v46 = vpack.c.bf16 %v737_v30, %v735_v29  ;;  %v1346_v50 = vpack.c.bf16 %v115_v32, %v113_v31 }
  0x45   :  { %417 = vperm.xlu1 %1425, %v1808_v60   ;;  %1401 = vmatpush1.bf16.msra.mxu1 %v1400_v61  ;;  %v1844_v38 = vld [vmem:[%s2670_s1 + $0xa8] sm:$0xff]  ;;  %v1852_v47 = vld [vmem:[#allocation3 + $0x1c0] sm:$0xff]  ;;  %v1854_v48 = vld [vmem:[#allocation3 + $0x1d0] sm:$0xff]  ;;  %v1410_v51 = vpack.c.bf16 %v742_v34, %v740_v33 }
  0x46   :  { %412 = vperm.xlu0 %1424, %v1814_v62   ;;  %1339 = vmatprep.subr.bf16.mxu0 %v1338_v1  ;;  %2776 = vst [vmem:[#allocation23_spill] sm:$0xff] %v1852_v47  ;;  %2777 = vst [vmem:[#allocation24_spill] sm:$0xff] %v1854_v48  ;;  %v40_v49 = vld [vmem:[%s2671_s2 + $0x8] sm:$0xff]  ;;  %v739_v53 = vld [vmem:[#allocation3 + $0x3c0] sm:$0xff]  ;;  %v1348_v6 = vpack.c.bf16 %v1854_v48, %v1852_v47 }
  0x47   :  { %1403 = vmatprep.subr.bf16.mxu1 %v1402_v2  ;;  %v741_v59 = vld [vmem:[#allocation3 + $0x3d0] sm:$0xff]  ;;  %v117_v61 = vld [vmem:[#allocation3 + $0x1e8] sm:$0xff]  ;;  %v119_v1 = vld [vmem:[#allocation3 + $0x1f8] sm:$0xff]  ;;  %204 = vmatprep.mubr.f32.mxu0 %v40_v49 }
  0x48   :  { %1341 = vmatpush1.bf16.msra.mxu0 %v1340_v15  ;;  %v744_v2 = vld [vmem:[#allocation3 + $0x3e8] sm:$0xff]  ;;  %v746_v3 = vld [vmem:[#allocation3 + $0x3f8] sm:$0xff]  ;;  %811 = vmatprep.mubr.f32.mxu1 %v40_v49  ;;  %v1412_v11 = vpack.c.bf16 %v741_v59, %v739_v53  ;;  %v1868_v13 = vld [vmem:[#allocation3 + $0x1e0] sm:$0xff] }
  0x49   :  { %427 = vperm.xlu1 %1425, %v1826_v16   ;;  %1405 = vmatpush1.bf16.msra.mxu1 %v1404_v17  ;;  %v1866_v12 = vld [vmem:[%s2670_s1 + $0xb8] sm:$0xff]  ;;  %2778 = vst [vmem:[#allocation25_spill] sm:$0xff] %v1868_v13  ;;  %v1870_v14 = vld [vmem:[#allocation3 + $0x1f0] sm:$0xff]  ;;  %v1350_v17 = vpack.c.bf16 %v119_v1, %v117_v61  ;;  %v1890_v32 = vld [vmem:[%s2670_s1 + $0xc8] sm:$0xff] }
  0x4a   :  { %422 = vperm.xlu0 %1424, %v1832_v18   ;;  %1343 = vmatprep.subr.bf16.mxu0 %v1342_v26  ;;  %2779 = vst [vmem:[#allocation26_spill] sm:$0xff] %v1870_v14  ;;  %v1875_v15 = vld [vmem:[%s2670_s1 + $0xb0] sm:$0xff]  ;;  %v1414_v26 = vpack.c.bf16 %v746_v3, %v744_v2  ;;  %v1352_v30 = vpack.c.bf16 %v1870_v14, %v1868_v13  ;;  %v1895_v33 = vld [vmem:[%s2670_s1 + $0xc0] sm:$0xff]  ;;  %v42_v49 = vld [vmem:[%s2671_s2 + $0x18] sm:$0xff] }
  0x4b   :  { %1407 = vmatprep.subr.bf16.mxu1 %v1406_v27  ;;  %v1877_v27 = vld [vmem:[#allocation3 + $0x3e0] sm:$0xff]  ;;  %v1879_v29 = vld [vmem:[#allocation3 + $0x3f0] sm:$0xff]  ;;  %v44_v59 = vld [vmem:[%s2671_s2 + $0x28] sm:$0xff] }
  0x4c   :  { %1345 = vmatpush1.bf16.msra.mxu0 %v1344_v35  ;;  %2780 = vst [vmem:[#allocation27_spill] sm:$0xff] %v1877_v27  ;;  %2781 = vst [vmem:[#allocation28_spill] sm:$0xff] %v1879_v29  ;;  %v1416_v31 = vpack.c.bf16 %v1879_v29, %v1877_v27  ;;  %v39_v34 = vld [vmem:[%s2671_s2] sm:$0xff]  ;;  %v325_v35 = vld [vmem:[%s2670_s1 + $0xd8] sm:$0xff] }
  0x4d   :  { %437 = vperm.xlu1 %1425, %v1844_v38   ;;  %1409 = vmatpush1.bf16.msra.mxu1 %v1408_v46  ;;  %v324_v46 = vld [vmem:[%s2670_s1 + $0xd0] sm:$0xff]  ;;  %v326_v53 = vld [vmem:[%s2670_s1 + $0xe0] sm:$0xff]  ;;  %v329_v1 = vld [vmem:[%s2670_s1 + $0xf8] sm:$0xff] }
  0x4e   :  { %432 = vperm.xlu0 %1424, %v1849_v45   ;;  %1347 = vmatprep.subr.bf16.mxu0 %v1346_v50  ;;  %v41_v50 = vld [vmem:[%s2671_s2 + $0x10] sm:$0xff]  ;;  %v43_v61 = vld [vmem:[%s2671_s2 + $0x20] sm:$0xff]  ;;  %v46_v3 = vld [vmem:[%s2671_s2 + $0x38] sm:$0xff] }
  0x4f   :  { %1411 = vmatprep.subr.bf16.mxu1 %v1410_v51  ;;  %v327_v51 = vld [vmem:[%s2670_s1 + $0xe8] sm:$0xff]  ;;  %v328_v2 = vld [vmem:[%s2670_s1 + $0xf0] sm:$0xff] }
  0x50   :  { %1349 = vmatpush1.bf16.msra.mxu0 %v1348_v6  ;;  %v45_v6 = vld [vmem:[%s2671_s2 + $0x30] sm:$0xff] }
  0x51   :  { %447 = vperm.xlu1 %1425, %v1866_v12   ;;  %1413 = vmatpush1.bf16.msra.mxu1 %v1412_v11  ;;  %v1604_v11 = vmov 1  }
  0x52   :  { %442 = vperm.xlu0 %1424, %v1875_v15   ;;  %1351 = vmatprep.subr.bf16.mxu0 %v1350_v17 }
  0x53   :  { %1415 = vmatprep.subr.bf16.mxu1 %v1414_v26 }
  0x54   :  { %1353 = vmatpush1.bf16.msra.mxu0 %v1352_v30 }
  0x55   :  { %457 = vperm.xlu1 %1425, %v1890_v32   ;;  %1417 = vmatpush1.bf16.msra.mxu1 %v1416_v31 }
  0x56   :  { %452 = vperm.xlu0 %1424, %v1895_v33  }
  0x57   :  { %205 = vmatmul.mubr.f32.vlgmr.msra.gmra.mrb[0].mxu0 %v39_v34 }
  0x58   :  { %812 = vmatmul.mubr.f32.vlgmr.msra.gmra.mrb[0].mxu1 %v39_v34  ;;  %210 = vmatprep.mubr.f32.mxu0 %v42_v49 }
  0x59   :  { %467 = vperm.xlu1 %1425, %v325_v35   ;;  %817 = vmatprep.mubr.f32.mxu1 %v42_v49 }
  0x5a   :  { %462 = vperm.xlu0 %1424, %v324_v46  }
  0x5b   :  { %211 = vmatmul.mubr.f32.gmra.mrb[2].mxu0 %v41_v50 }
  0x5c   :  { %818 = vmatmul.mubr.f32.gmra.mrb[2].mxu1 %v41_v50  ;;  %216 = vmatprep.mubr.f32.mxu0 %v44_v59 }
  0x5d   :  { %477 = vperm.xlu1 %1425, %v327_v51   ;;  %823 = vmatprep.mubr.f32.mxu1 %v44_v59 }
  0x5e   :  { %472 = vperm.xlu0 %1424, %v326_v53  }
  0x5f   :  { %217 = vmatmul.mubr.f32.gmra.mrb[4].mxu0 %v43_v61 }
  0x60   :  { %824 = vmatmul.mubr.f32.gmra.mrb[4].mxu1 %v43_v61  ;;  %222 = vmatprep.mubr.f32.mxu0 %v46_v3 }
  0x61   :  { %487 = vperm.xlu1 %1425, %v329_v1   ;;  %829 = vmatprep.mubr.f32.mxu1 %v46_v3 }
  0x62   :  { %482 = vperm.xlu0 %1424, %v328_v2  }
  0x63   :  { %223 = vmatmul.mubr.f32.gmra.mrb[6].mxu0 %v45_v6 }
  0x64   :  { %830 = vmatmul.mubr.f32.gmra.mrb[6].mxu1 %v45_v6 }
  0x65   :  { %1427 = vset.pattern.permute.xlu1 %v1604_v11 }
  0x66   :  { %1426 = vset.pattern.permute.xlu0 %v1604_v11  ;;  %923 = vperm.xlu1 %1427, %v1683_v56  }
  0x67   :  { %918 = vperm.xlu0 %1426, %v1688_v57  }
  0x6a   :  { %928 = vperm.xlu1 %1427, %v1699_v7  }
  0x6b   :  { %933 = vperm.xlu0 %1426, %v1693_v5  }
  0x6e   :  { %938 = vperm.xlu1 %1427, %v1712_v28  }
  0x6f   :  { %943 = vperm.xlu0 %1426, %v1707_v25  }
  0x72   :  { %948 = vperm.xlu1 %1427, %v1724_v40  }
  0x73   :  { %953 = vperm.xlu0 %1426, %v1718_v37  }
  0x76   :  { %958 = vperm.xlu1 %1427, %v1742_v54  }
  0x77   :  { %963 = vperm.xlu0 %1426, %v1736_v52  }
  0x7a   :  { %968 = vperm.xlu1 %1427, %v1760_v8  }
  0x7b   :  { %973 = vperm.xlu0 %1426, %v1754_v4  }
  0x7e   :  { %978 = vperm.xlu1 %1427, %v1778_v22  }
  0x7f   :  { %983 = vperm.xlu0 %1426, %v1772_v20  }
  0x82   :  { %988 = vperm.xlu1 %1427, %v1796_v39  }
  0x83   :  { %993 = vperm.xlu0 %1426, %v1790_v36  }
  0x86   :  { %998 = vperm.xlu1 %1427, %v1814_v62  }
  0x87   :  { %1003 = vperm.xlu0 %1426, %v1808_v60  }
  0x8a   :  { %1008 = vperm.xlu1 %1427, %v1832_v18  }
  0x8b   :  { %1013 = vperm.xlu0 %1426, %v1826_v16  }
  0x8e   :  { %1018 = vperm.xlu1 %1427, %v1849_v45  }
  0x8f   :  { %1023 = vperm.xlu0 %1426, %v1844_v38  }
  0x92   :  { %1028 = vperm.xlu1 %1427, %v1875_v15  }
  0x93   :  { %1033 = vperm.xlu0 %1426, %v1866_v12  }
  0x94   :  { %v1964_v56 = vpop.permute.xlu1 %132  ;;  %v123_v57 = vpop.permute.xlu0 %122 }
  0x96   :  { %1038 = vperm.xlu1 %1427, %v1895_v33  }
  0x97   :  { %1043 = vperm.xlu0 %1426, %v1890_v32  }
  0x98   :  { %v1966_v5 = vpop.permute.xlu1 %137 }
  0x99   :  { %v1968_v7 = vpop.permute.xlu0 %127 }
  0x9a   :  { %1048 = vperm.xlu1 %1427, %v324_v46  }
  0x9b   :  { %1053 = vperm.xlu0 %1426, %v325_v35  }
  0x9c   :  { %v1970_v25 = vpop.permute.xlu1 %244 }
  0x9d   :  { %v1972_v28 = vpop.permute.xlu0 %239 }
  0x9e   :  { %1058 = vperm.xlu1 %1427, %v326_v53  }
  0x9f   :  { %1063 = vperm.xlu0 %1426, %v327_v51  }
  0xa0   :  { %v1974_v37 = vpop.permute.xlu1 %254 }
  0xa1   :  { %v1976_v40 = vpop.permute.xlu0 %249 }
  0xa2   :  { %1068 = vperm.xlu1 %1427, %v328_v2  }
  0xa3   :  { %1073 = vperm.xlu0 %1426, %v329_v1  }
  0xa4   :  { %v1978_v52 = vpop.permute.xlu1 %337 }
  0xa5   :  { %2782 = vst [vmem:[#allocation29_spill] sm:$0xff] %v1978_v52  ;;  %v1980_v54 = vpop.permute.xlu0 %332 }
  0xa6   :  { %2783 = vst [vmem:[#allocation30_spill] sm:$0xff] %v1980_v54 }
  0xa8   :  { %v1982_v4 = vpop.permute.xlu1 %347 }
  0xa9   :  { %2784 = vst [vmem:[#allocation31_spill] sm:$0xff] %v1982_v4  ;;  %v1984_v8 = vpop.permute.xlu0 %342 }
  0xaa   :  { %2785 = vst [vmem:[#allocation32_spill] sm:$0xff] %v1984_v8 }
  0xac   :  { %v1986_v20 = vpop.permute.xlu1 %357 }
  0xad   :  { %2786 = vst [vmem:[#allocation33_spill] sm:$0xff] %v1986_v20  ;;  %v1988_v22 = vpop.permute.xlu0 %352 }
  0xae   :  { %2787 = vst [vmem:[#allocation34_spill] sm:$0xff] %v1988_v22 }
  0xb0   :  { %v1990_v36 = vpop.permute.xlu1 %367 }
  0xb1   :  { %2788 = vst [vmem:[#allocation35_spill] sm:$0xff] %v1990_v36  ;;  %v1992_v39 = vpop.permute.xlu0 %362 }
  0xb2   :  { %2789 = vst [vmem:[#allocation36_spill] sm:$0xff] %v1992_v39 }
  0xb4   :  { %v1994_v60 = vpop.permute.xlu1 %377 }
  0xb5   :  { %2790 = vst [vmem:[#allocation37_spill] sm:$0xff] %v1994_v60  ;;  %v1996_v62 = vpop.permute.xlu0 %372 }
  0xb6   :  { %2791 = vst [vmem:[#allocation38_spill] sm:$0xff] %v1996_v62 }
  0xb8   :  { %v1998_v16 = vpop.permute.xlu1 %387 }
  0xb9   :  { %2792 = vst [vmem:[#allocation39_spill] sm:$0xff] %v1998_v16  ;;  %v2000_v18 = vpop.permute.xlu0 %382 }
  0xba   :  { %2793 = vst [vmem:[#allocation40_spill] sm:$0xff] %v2000_v18 }
  0xbc   :  { %v2002_v38 = vpop.permute.xlu1 %397 }
  0xbd   :  { %2794 = vst [vmem:[#allocation41_spill] sm:$0xff] %v2002_v38  ;;  %v2004_v45 = vpop.permute.xlu0 %392 }
  0xbe   :  { %2795 = vst [vmem:[#allocation42_spill] sm:$0xff] %v2004_v45 }
  0xc0   :  { %v2006_v12 = vpop.permute.xlu1 %407 }
  0xc1   :  { %2796 = vst [vmem:[#allocation43_spill] sm:$0xff] %v2006_v12  ;;  %v2008_v15 = vpop.permute.xlu0 %402 }
  0xc2   :  { %2797 = vst [vmem:[#allocation44_spill] sm:$0xff] %v2008_v15 }
  0xc4   :  { %v2010_v17 = vpop.permute.xlu1 %417 }
  0xc5   :  { %2798 = vst [vmem:[#allocation45_spill] sm:$0xff] %v2010_v17  ;;  %v2012_v26 = vpop.permute.xlu0 %412 }
  0xc6   :  { %2799 = vst [vmem:[#allocation46_spill] sm:$0xff] %v2012_v26 }
  0xc8   :  { %v2014_v30 = vpop.permute.xlu1 %427 }
  0xc9   :  { %2800 = vst [vmem:[#allocation47_spill] sm:$0xff] %v2014_v30  ;;  %v2016_v31 = vpop.permute.xlu0 %422 }
  0xca   :  { %2801 = vst [vmem:[#allocation48_spill] sm:$0xff] %v2016_v31 }
  0xcc   :  { %v2018_v32 = vpop.permute.xlu1 %437 }
  0xcd   :  { %2802 = vst [vmem:[#allocation49_spill] sm:$0xff] %v2018_v32  ;;  %v2020_v33 = vpop.permute.xlu0 %432 }
  0xce   :  { %2803 = vst [vmem:[#allocation50_spill] sm:$0xff] %v2020_v33 }
  0xd0   :  { %v2022_v34 = vpop.permute.xlu1 %447 }
  0xd1   :  { %2804 = vst [vmem:[#allocation51_spill] sm:$0xff] %v2022_v34  ;;  %v2024_v35 = vpop.permute.xlu0 %442 }
  0xd2   :  { %2805 = vst [vmem:[#allocation52_spill] sm:$0xff] %v2024_v35 }
  0xd4   :  { %v2026_v46 = vpop.permute.xlu1 %457 }
  0xd5   :  { %2806 = vst [vmem:[#allocation53_spill] sm:$0xff] %v2026_v46  ;;  %v2028_v49 = vpop.permute.xlu0 %452 }
  0xd6   :  { %2807 = vst [vmem:[#allocation54_spill] sm:$0xff] %v2028_v49 }
  0xd8   :  { %v2030_v50 = vpop.permute.xlu1 %467 }
  0xd9   :  { %2808 = vst [vmem:[#allocation55_spill] sm:$0xff] %v2030_v50  ;;  %v2032_v51 = vpop.permute.xlu0 %462 }
  0xda   :  { %2809 = vst [vmem:[#allocation56_spill] sm:$0xff] %v2032_v51 }
  0xdc   :  { %v2034_v53 = vpop.permute.xlu1 %477 }
  0xdd   :  { %2810 = vst [vmem:[#allocation57_spill] sm:$0xff] %v2034_v53  ;;  %v2036_v59 = vpop.permute.xlu0 %472 }
  0xde   :  { %2811 = vst [vmem:[#allocation58_spill] sm:$0xff] %v2036_v59 }
  0xe0   :  { %v2038_v61 = vpop.permute.xlu1 %487 }
  0xe1   :  { %2812 = vst [vmem:[#allocation59_spill] sm:$0xff] %v2038_v61  ;;  %v2040_v1 = vpop.permute.xlu0 %482 }
  0xe2   :  { %2813 = vst [vmem:[#allocation60_spill] sm:$0xff] %v2040_v1 }
  0xe5   :  { %v2042_v2 = vpop.permute.xlu1 %923 }
  0xe6   :  { %2814 = vst [vmem:[#allocation61_spill] sm:$0xff] %v2042_v2  ;;  %v2044_v3 = vpop.permute.xlu0 %918 }
  0xe7   :  { %2815 = vst [vmem:[#allocation62_spill] sm:$0xff] %v2044_v3 }
  0xe9   :  { %v2046_v6 = vpop.permute.xlu1 %928 }
  0xea   :  { %2816 = vst [vmem:[#allocation63_spill] sm:$0xff] %v2046_v6  ;;  %v2048_v11 = vpop.permute.xlu0 %933 }
  0xeb   :  { %2817 = vst [vmem:[#allocation64_spill] sm:$0xff] %v2048_v11 }
  0xed   :  { %v2050_v19 = vpop.permute.xlu1 %938 }
  0xee   :  { %2818 = vst [vmem:[#allocation65_spill] sm:$0xff] %v2050_v19  ;;  %v2052_v44 = vpop.permute.xlu0 %943 }
  0xef   :  { %2819 = vst [vmem:[#allocation66_spill] sm:$0xff] %v2052_v44 }
 0x12a   :  { %v206_v29 = vpop.f32.mrb[0].mxu0 }
 0x12b   :  { %v207_v27 = vadd.f32 %v206_v29, %v123_v57  ;;  %v813_v14 = vpop.f32.mrb[0].mxu1  ;;  %v208_v13 = vpop.f32.mrb[1].mxu0 }
 0x12c   :  { %v814_v48 = vadd.f32 %v813_v14, %v123_v57  ;;  %v209_v47 = vadd.f32 %v208_v13, %v123_v57  ;;  %v815_v21 = vpop.f32.mrb[1].mxu1 }
 0x12d   :  { %v229_v0 = vmax.f32 %v207_v27, 0.0  ;;  %v816_v63 = vadd.f32 %v815_v21, %v123_v57 }
 0x12e   :  { %v836_v2 = vmax.f32 %v814_v48, 0.0  ;;  %v230_v43 = vmax.f32 %v209_v47, 0.0  ;;  %v212_v3 = vpop.f32.mrb[2].mxu0 }
 0x12f   :  { %v837_v24 = vmax.f32 %v816_v63, 0.0  ;;  %v213_v6 = vadd.f32 %v212_v3, %v1968_v7  ;;  %v819_v11 = vpop.f32.mrb[2].mxu1  ;;  %v214_v23 = vpop.f32.mrb[3].mxu0  ;;  %v257_v10 = vmul.f32 %v1972_v28, %v229_v0 }
 0x130   :  { %v820_v29 = vadd.f32 %v819_v11, %v1968_v7  ;;  %v215_v14 = vadd.f32 %v214_v23, %v1968_v7  ;;  %v821_v13 = vpop.f32.mrb[3].mxu1  ;;  %v844_v27 = vmul.f32 %v836_v2, %v1972_v28  ;;  %v258_v47 = vmul.f32 %v1972_v28, %v230_v43 }
 0x131   :  { %v231_v19 = vmax.f32 %v213_v6, 0.0  ;;  %v822_v21 = vadd.f32 %v821_v13, %v1968_v7  ;;  %v845_v3 = vmul.f32 %v837_v24, %v1972_v28 }
 0x132   :  { %v838_v48 = vmax.f32 %v820_v29, 0.0  ;;  %v232_v63 = vmax.f32 %v215_v14, 0.0  ;;  %v218_v57 = vpop.f32.mrb[4].mxu0  ;;  %v2068_v29 = vpop.permute.xlu1 %948 }
 0x133   :  { %v259_v44 = vmul.f32 %v1970_v25, %v231_v19  ;;  %v839_v11 = vmax.f32 %v822_v21, 0.0  ;;  %v219_v23 = vadd.f32 %v218_v57, %v1964_v56  ;;  %v825_v9 = vpop.f32.mrb[4].mxu1  ;;  %v220_v58 = vpop.f32.mrb[5].mxu0  ;;  %2820 = vst [vmem:[#allocation67_spill] sm:$0xff] %v2068_v29 }
 0x134   :  { %v846_v0 = vmul.f32 %v838_v48, %v1970_v25  ;;  %v260_v7 = vmul.f32 %v1970_v25, %v232_v63  ;;  %v826_v2 = vadd.f32 %v825_v9, %v1964_v56  ;;  %v221_v43 = vadd.f32 %v220_v58, %v1964_v56  ;;  %v827_v6 = vpop.f32.mrb[5].mxu1  ;;  %v2070_v14 = vpop.permute.xlu0 %953 }
 0x135   :  { %2821 = vst [vmem:[#allocation68_spill] sm:$0xff] %v2070_v14  ;;  %v265_v24 = vadd.f32 %v259_v44, %v257_v10  ;;  %v847_v19 = vmul.f32 %v839_v11, %v1970_v25  ;;  %v233_v28 = vmax.f32 %v219_v23, 0.0  ;;  %v828_v13 = vadd.f32 %v827_v6, %v1964_v56 }
 0x136   :  { %v852_v21 = vadd.f32 %v846_v0, %v844_v27  ;;  %v274_v57 = vadd.f32 %v260_v7, %v258_v47  ;;  %v840_v48 = vmax.f32 %v826_v2, 0.0  ;;  %v234_v55 = vmax.f32 %v221_v43, 0.0  ;;  %v224_v63 = vpop.f32.mrb[6].mxu0  ;;  %v2082_v6 = vpop.permute.xlu1 %958 }
 0x137   :  { %v861_v42 = vadd.f32 %v847_v19, %v845_v3  ;;  %v261_v9 = vmul.f32 %v1976_v40, %v233_v28  ;;  %v841_v58 = vmax.f32 %v828_v13, 0.0  ;;  %v225_v41 = vadd.f32 %v224_v63, %v1966_v5  ;;  %v831_v29 = vpop.f32.mrb[6].mxu1  ;;  %v226_v61 = vpop.f32.mrb[7].mxu0  ;;  %2822 = vst [vmem:[#allocation69_spill] sm:$0xff] %v2082_v6 }
 0x138   :  { %v848_v10 = vmul.f32 %v840_v48, %v1976_v40  ;;  %v262_v44 = vmul.f32 %v1976_v40, %v234_v55  ;;  %v832_v25 = vadd.f32 %v831_v29, %v1966_v5  ;;  %v227_v56 = vadd.f32 %v226_v61, %v1966_v5  ;;  %v833_v27 = vpop.f32.mrb[7].mxu1  ;;  %v2084_v19 = vpop.permute.xlu0 %963 }
 0x139   :  { %v266_v47 = vadd.f32 %v265_v24, %v261_v9  ;;  %v849_v11 = vmul.f32 %v841_v58, %v1976_v40  ;;  %v235_v3 = vmax.f32 %v225_v41, 0.0  ;;  %v834_v23 = vadd.f32 %v833_v27, %v1966_v5  ;;  %2823 = vst [vmem:[#allocation70_spill] sm:$0xff] %v2084_v19 }
 0x13a   :  { %v853_v0 = vadd.f32 %v852_v21, %v848_v10  ;;  %v275_v7 = vadd.f32 %v274_v57, %v262_v44  ;;  %v842_v2 = vmax.f32 %v832_v25, 0.0  ;;  %v236_v43 = vmax.f32 %v227_v56, 0.0  ;;  %v2090_v9 = vpop.permute.xlu1 %968 }
 0x13b   :  { %v862_v55 = vadd.f32 %v861_v42, %v849_v11  ;;  %v263_v29 = vmul.f32 %v1974_v37, %v235_v3  ;;  %v843_v28 = vmax.f32 %v834_v23, 0.0  ;;  %2824 = vst [vmem:[#allocation71_spill] sm:$0xff] %v2090_v9 }
 0x13c   :  { %v850_v61 = vmul.f32 %v842_v2, %v1974_v37  ;;  %v264_v24 = vmul.f32 %v1974_v37, %v236_v43  ;;  %v2092_v58 = vpop.permute.xlu0 %973 }
 0x13d   :  { %v267_v40 = vadd.f32 %v266_v47, %v263_v29  ;;  %v851_v41 = vmul.f32 %v843_v28, %v1974_v37  ;;  %2825 = vst [vmem:[#allocation72_spill] sm:$0xff] %v2092_v58  ;;  %v283_v29 = vstv %s2674_s5  ;;  %s1605_s5 = smov [#allocation6]  }
 0x13e   :  { %v854_v5 = vadd.f32 %v853_v0, %v850_v61  ;;  %v276_v13 = vadd.f32 %v275_v7, %v264_v24  ;;  %v2094_v7 = vpop.permute.xlu1 %978  ;;  %s2639_s29 = sshll.u32 %s1605_s5, 4  ;;  %s1275_s29 = int_to_ptr.vmem [resolvable:$true] %s2639_s29 }
 0x13f   :  { %v268_v21 = vrot.slane %v267_v40, 4  ;;  %v863_v57 = vadd.f32 %v862_v55, %v851_v41  ;;  %2826 = vst [vmem:[#allocation73_spill] sm:$0xff] %v2094_v7  ;;  %s1574_s30 = scalar_lea.vmem %s1275_s29, 16384  ;;  %p1579_p9 = scmp.lt.s32.totalorder %s1275_s29, %s1275_s29 }
 0x140   :  { %v855_v48 = vrot.slane %v854_v5, 4  ;;  %v277_v63 = vrot.slane %v276_v13, 4  ;;  %v2096_v2 = vpop.permute.xlu0 %983  ;;  %p1575_p8 = scmp.ne.s32.totalorder %s1275_s29, %s1574_s30  ;;  %p1580_p10 = scmp.lt.s32.totalorder %s1574_s30, %s1574_s30 }
 0x141   :  { %v269_v42 = vadd.f32 %v268_v21, %v267_v40  ;;  %v864_v10 = vrot.slane %v863_v57, 4  ;;  %2827 = vst [vmem:[#allocation74_spill] sm:$0xff] %v2096_v2 }
 0x142   :  { %v856_v44 = vadd.f32 %v855_v48, %v854_v5  ;;  %v278_v25 = vadd.f32 %v277_v63, %v276_v13  ;;  %v2101_v63 = vpop.permute.xlu1 %988  ;;  %p1581_p11 = por %p1580_p10, %p1579_p9 }
 0x143   :  { %v270_v56 = vrot.slane %v269_v42, 2  ;;  %v865_v27 = vadd.f32 %v864_v10, %v863_v57  ;;  %2828 = vst [vmem:[#allocation75_spill] sm:$0xff] %v2101_v63 }
 0x144   :  { %v857_v11 = vrot.slane %v856_v44, 2  ;;  %v279_v47 = vrot.slane %v278_v25, 2  ;;  %p1582_p12 = pnand %p1581_p11, %p1575_p8 }
 0x145   :  { %v271_v3 = vadd.f32 %v270_v56, %v269_v42  ;;  %v866_v37 = vrot.slane %v865_v27, 2  ;;  %v2103_v42 = vpop.permute.xlu0 %993 }
 0x146   :  { %v858_v23 = vadd.f32 %v857_v11, %v856_v44  ;;  %v280_v0 = vadd.f32 %v279_v47, %v278_v25  ;;  %2829 = vst [vmem:[#allocation76_spill] sm:$0xff] %v2103_v42  ;;  %v2105_v11 = vpop.permute.xlu1 %998 }
 0x147   :  { %v272_v43 = vrot.slane %v271_v3, 1  ;;  %v867_v55 = vadd.f32 %v866_v37, %v865_v27  ;;  %2830 = vst [vmem:[#allocation77_spill] sm:$0xff] %v2105_v11 }
 0x148   :  { %v859_v28 = vrot.slane %v858_v23, 1  ;;  %v281_v61 = vrot.slane %v280_v0, 1 }
 0x149   :  { %v273_v24 = vadd.f32 %v272_v43, %v271_v3  ;;  %v868_v40 = vrot.slane %v867_v55, 1  ;;  %v2107_v47 = vpop.permute.xlu0 %1003 }
 0x14a   :  { %v860_v41 = vadd.f32 %v859_v28, %v858_v23  ;;  %v282_v5 = vadd.f32 %v281_v61, %v280_v0  ;;  %2831 = vst [vmem:[#allocation78_spill] sm:$0xff] %v2107_v47  ;;  %v2109_v37 = vpop.permute.xlu1 %1008 }
 0x14b   :  { %v284_v13 = vadd.f32 %v283_v29, %v273_v24  ;;  %v869_v21 = vadd.f32 %v868_v40, %v867_v55  ;;  %2832 = vst [vmem:[#allocation79_spill] sm:$0xff] %v2109_v37 }
 0x14c   :  { %v870_v57 = vadd.f32 %v860_v41, %v283_v29  ;;  %v285_v48 = vadd.f32 %v283_v29, %v282_v5 }
 0x14d   :  { %v1286_v10 = vmul.f32 -1.442695, %v284_v13  ;;  %v871_v44 = vadd.f32 %v869_v21, %v283_v29  ;;  %v2111_v23 = vpop.permute.xlu0 %1013 }
 0x14e   :  { %v1288_v25 = vmul.f32 -1.442695, %v870_v57  ;;  %v1287_v56 = vmul.f32 -1.442695, %v285_v48  ;;  %2833 = vst [vmem:[#allocation80_spill] sm:$0xff] %v2111_v23  ;;  %v2113_v28 = vpop.permute.xlu1 %1018 }
 0x14f   :  { %1428 = vpow2.f32 %v1286_v10  ;;  %v1289_v27 = vmul.f32 -1.442695, %v871_v44  ;;  %2834 = vst [vmem:[#allocation81_spill] sm:$0xff] %v2113_v28 }
 0x150   :  { %1430 = vpow2.f32 %v1288_v25 }
 0x151   :  { %1432 = vpow2.f32 %v1287_v56  ;;  %v2115_v61 = vpop.permute.xlu0 %1023 }
 0x152   :  { %1434 = vpow2.f32 %v1289_v27  ;;  %2835 = vst [vmem:[#allocation82_spill] sm:$0xff] %v2115_v61  ;;  %v2117_v5 = vpop.permute.xlu1 %1028  ;;  %v1450_v61 = vld [vmem:[#allocation3 + $0x60] sm:$0xff] }
 0x153   :  { %2836 = vst [vmem:[#allocation83_spill] sm:$0xff] %v2117_v5  ;;  %v1449_v5 = vld [vmem:[#allocation3 + $0x50] sm:$0xff] }
 0x155   :  { %v2119_v13 = vpop.permute.xlu0 %1033 }
 0x156   :  { %2837 = vst [vmem:[#allocation84_spill] sm:$0xff] %v2119_v13 }
 0x159   :  { %v1429_v3 = vpop.eup %1428 }
 0x15a   :  { %v292_v0 = vadd.f32 1.0, %v1429_v3  ;;  %v1431_v43 = vpop.eup %1430 }
 0x15b   :  { %v1433_v55 = vpop.eup %1432  ;;  %v878_v24 = vadd.f32 1.0, %v1431_v43 }
 0x15c   :  { %1436 = vrcp.f32 %v292_v0  ;;  %v1435_v29 = vpop.eup %1434  ;;  %v293_v40 = vadd.f32 1.0, %v1433_v55 }
 0x15d   :  { %v879_v41 = vadd.f32 1.0, %v1435_v29  ;;  %1438 = vrcp.f32 %v878_v24 }
 0x15e   :  { %1440 = vrcp.f32 %v293_v40 }
 0x15f   :  { %1442 = vrcp.f32 %v879_v41 }
 0x166   :  { %v1437_v21 = vpop.eup %1436 }
 0x167   :  { %v490_v57 = vmul.f32 %v1437_v21, %v1980_v54  ;;  %v492_v48 = vmul.f32 %v1437_v21, %v1978_v52  ;;  %v494_v10 = vmul.f32 %v1437_v21, %v1984_v8  ;;  %v496_v44 = vmul.f32 %v1437_v21, %v1982_v4  ;;  %v1446_v52 = vld [vmem:[#allocation3 + $0x20] sm:$0xff] }
 0x168   :  { %v498_v25 = vmul.f32 %v1437_v21, %v1988_v22  ;;  %v500_v56 = vmul.f32 %v1437_v21, %v1986_v20  ;;  %v502_v27 = vmul.f32 %v1437_v21, %v1992_v39  ;;  %v504_v3 = vmul.f32 %v1437_v21, %v1990_v36  ;;  %v2137_v22 = vpop.permute.xlu1 %1038  ;;  %v2139_v39 = vpop.permute.xlu0 %1043 }
 0x169   :  { %v506_v0 = vmul.f32 %v1437_v21, %v1996_v62  ;;  %v508_v43 = vmul.f32 %v1437_v21, %v1994_v60  ;;  %v510_v55 = vmul.f32 %v1437_v21, %v2000_v18  ;;  %v512_v29 = vmul.f32 %v1437_v21, %v1998_v16  ;;  %2838 = vst [vmem:[#allocation85_spill] sm:$0xff] %v2137_v22 }
 0x16a   :  { %v514_v24 = vmul.f32 %v1437_v21, %v2004_v45  ;;  %v516_v40 = vmul.f32 %v1437_v21, %v2002_v38  ;;  %v518_v41 = vmul.f32 %v1437_v21, %v2008_v15  ;;  %v520_v20 = vmul.f32 %v1437_v21, %v2006_v12  ;;  %2839 = vst [vmem:[#allocation86_spill] sm:$0xff] %v2139_v39  ;;  %v1447_v39 = vld [vmem:[#allocation3 + $0x30] sm:$0xff] }
 0x16b   :  { %v522_v62 = vmul.f32 %v1437_v21, %v2012_v26  ;;  %v524_v60 = vmul.f32 %v1437_v21, %v2010_v17  ;;  %v526_v18 = vmul.f32 %v1437_v21, %v2016_v31  ;;  %v528_v16 = vmul.f32 %v1437_v21, %v2014_v30  ;;  %v2840_v31 = vld [vmem:[#allocation59_spill] sm:$0xff] }
 0x16c   :  { %v2146_v45 = vmul.f32 %v1437_v21, %v2020_v33  ;;  %v2149_v38 = vmul.f32 %v1437_v21, %v2018_v32  ;;  %v2152_v12 = vmul.f32 %v1437_v21, %v2024_v35  ;;  %v2155_v15 = vmul.f32 %v1437_v21, %v2022_v34  ;;  %v2169_v32 = vpop.eup %1438  ;;  %v2187_v23 = vpop.permute.xlu1 %1048 }
 0x16d   :  { %v2158_v26 = vmul.f32 %v1437_v21, %v2028_v49  ;;  %v2161_v17 = vmul.f32 %v1437_v21, %v2026_v46  ;;  %v2164_v30 = vmul.f32 %v1437_v21, %v2032_v51  ;;  %v2167_v33 = vmul.f32 %v1437_v21, %v2030_v50  ;;  %v2183_v36 = vpop.eup %1440  ;;  %v1444_v51 = vld [vmem:[#allocation3] sm:$0xff]  ;;  %v1445_v50 = vld [vmem:[#allocation3 + $0x10] sm:$0xff]  ;;  %2843 = vst [vmem:[#allocation89_spill] sm:$0xff] %v2187_v23 }
 0x16e   :  { %v2172_v35 = vmul.f32 %v1437_v21, %v2036_v59  ;;  %v2175_v34 = vmul.f32 %v1437_v21, %v2034_v53  ;;  %v2178_v49 = vmul.f32 %v1437_v21, %v2040_v1  ;;  %v2181_v46 = vmul.f32 %v1437_v21, %v2840_v31  ;;  %2841 = vst [vmem:[#allocation87_spill] sm:$0xff] %v2183_v36  ;;  %v2185_v22 = vpop.eup %1442  ;;  %v1448_v53 = vld [vmem:[#allocation3 + $0x40] sm:$0xff]  ;;  %v1451_v21 = vld [vmem:[#allocation3 + $0x70] sm:$0xff]  ;;  %v2189_v36 = vpop.permute.xlu0 %1053 }
 0x16f   :  { %v554_v4 = vadd.f32 %v1444_v51, %v490_v57  ;;  %v556_v8 = vadd.f32 %v1445_v50, %v492_v48  ;;  %v558_v54 = vadd.f32 %v1446_v52, %v494_v10  ;;  %v560_v59 = vadd.f32 %v1447_v39, %v496_v44  ;;  %2842 = vst [vmem:[#allocation88_spill] sm:$0xff] %v2185_v22  ;;  %v1452_v51 = vld [vmem:[#allocation3 + $0x80] sm:$0xff]  ;;  %v1453_v57 = vld [vmem:[#allocation3 + $0x90] sm:$0xff]  ;;  %v2913_v22 = vld [vmem:[#allocation54_spill] sm:$0xff] }
 0x170   :  { %v562_v13 = vadd.f32 %v1448_v53, %v498_v25  ;;  %v564_v1 = vadd.f32 %v1449_v5, %v500_v56  ;;  %v566_v28 = vadd.f32 %v1450_v61, %v502_v27  ;;  %v568_v31 = vadd.f32 %v1451_v21, %v504_v3  ;;  %2844 = vst [vmem:[#allocation90_spill] sm:$0xff] %v2189_v36  ;;  %v1454_v48 = vld [vmem:[#allocation3 + $0xa0] sm:$0xff]  ;;  %v1455_v10 = vld [vmem:[#allocation3 + $0xb0] sm:$0xff]  ;;  %v2846_v3 = vld [vmem:[#allocation10_spill] sm:$0xff] }
 0x171   :  { %v570_v50 = vadd.f32 %v1452_v51, %v506_v0  ;;  %v572_v52 = vadd.f32 %v1453_v57, %v508_v43  ;;  %v574_v39 = vadd.f32 %v1454_v48, %v510_v55  ;;  %v576_v44 = vadd.f32 %v1455_v10, %v512_v29  ;;  %618 = vst [vmem:[#allocation6] sm:$0xff] %v554_v4  ;;  %v1456_v53 = vld [vmem:[#allocation3 + $0xc0] sm:$0xff]  ;;  %v1457_v5 = vld [vmem:[#allocation3 + $0xd0] sm:$0xff]  ;;  %v2848_v55 = vld [vmem:[#allocation12_spill] sm:$0xff] }
 0x172   :  { %620 = vst [vmem:[#allocation6 + $0x10] sm:$0xff] %v556_v8  ;;  %622 = vst [vmem:[#allocation6 + $0x20] sm:$0xff] %v558_v54  ;;  %v578_v61 = vadd.f32 %v1456_v53, %v514_v24  ;;  %v580_v25 = vadd.f32 %v1457_v5, %v516_v40  ;;  %v2845_v56 = vld [vmem:[#allocation9_spill] sm:$0xff]  ;;  %v584_v21 = vadd.f32 %v520_v20, %v2846_v3  ;;  %v2847_v0 = vld [vmem:[#allocation11_spill] sm:$0xff] }
 0x173   :  { %624 = vst [vmem:[#allocation6 + $0x30] sm:$0xff] %v560_v59  ;;  %v582_v27 = vadd.f32 %v518_v41, %v2845_v56  ;;  %626 = vst [vmem:[#allocation6 + $0x40] sm:$0xff] %v562_v13  ;;  %v586_v43 = vadd.f32 %v522_v62, %v2847_v0  ;;  %v588_v29 = vadd.f32 %v524_v60, %v2848_v55  ;;  %v2849_v4 = vld [vmem:[#allocation13_spill] sm:$0xff]  ;;  %v2850_v54 = vld [vmem:[#allocation14_spill] sm:$0xff] }
 0x174   :  { %628 = vst [vmem:[#allocation6 + $0x50] sm:$0xff] %v564_v1  ;;  %630 = vst [vmem:[#allocation6 + $0x60] sm:$0xff] %v566_v28  ;;  %v590_v8 = vadd.f32 %v526_v18, %v2849_v4  ;;  %v592_v59 = vadd.f32 %v528_v16, %v2850_v54  ;;  %v2851_v24 = vld [vmem:[#allocation15_spill] sm:$0xff]  ;;  %v2852_v20 = vld [vmem:[#allocation16_spill] sm:$0xff]  ;;  %v2255_v0 = vmul.f32 %v2169_v32, %v2070_v14 }
 0x175   :  { %632 = vst [vmem:[#allocation6 + $0x70] sm:$0xff] %v568_v31  ;;  %634 = vst [vmem:[#allocation6 + $0x80] sm:$0xff] %v570_v50  ;;  %v594_v40 = vadd.f32 %v2146_v45, %v2851_v24  ;;  %v596_v1 = vadd.f32 %v2149_v38, %v2852_v20  ;;  %v2853_v28 = vld [vmem:[#allocation17_spill] sm:$0xff]  ;;  %v2854_v62 = vld [vmem:[#allocation18_spill] sm:$0xff]  ;;  %v2263_v55 = vmul.f32 %v2169_v32, %v2084_v19 }
 0x176   :  { %636 = vst [vmem:[#allocation6 + $0x90] sm:$0xff] %v572_v52  ;;  %638 = vst [vmem:[#allocation6 + $0xa0] sm:$0xff] %v574_v39  ;;  %v598_v31 = vadd.f32 %v2152_v12, %v2853_v28  ;;  %v600_v60 = vadd.f32 %v2155_v15, %v2854_v62  ;;  %v2855_v16 = vld [vmem:[#allocation19_spill] sm:$0xff]  ;;  %v2856_v13 = vld [vmem:[#allocation20_spill] sm:$0xff]  ;;  %v2271_v4 = vmul.f32 %v2169_v32, %v2092_v58 }
 0x177   :  { %640 = vst [vmem:[#allocation6 + $0xb0] sm:$0xff] %v576_v44  ;;  %642 = vst [vmem:[#allocation6 + $0xc0] sm:$0xff] %v578_v61  ;;  %v602_v18 = vadd.f32 %v2158_v26, %v2855_v16  ;;  %v604_v41 = vadd.f32 %v2161_v17, %v2856_v13  ;;  %v2857_v45 = vld [vmem:[#allocation21_spill] sm:$0xff]  ;;  %v2858_v38 = vld [vmem:[#allocation22_spill] sm:$0xff]  ;;  %v2279_v54 = vmul.f32 %v2169_v32, %v2096_v2 }
 0x178   :  { %644 = vst [vmem:[#allocation6 + $0xd0] sm:$0xff] %v580_v25  ;;  %646 = vst [vmem:[#allocation6 + $0xe0] sm:$0xff] %v582_v27  ;;  %v606_v51 = vadd.f32 %v2164_v30, %v2857_v45  ;;  %v608_v50 = vadd.f32 %v2167_v33, %v2858_v38  ;;  %v2859_v12 = vld [vmem:[#allocation23_spill] sm:$0xff]  ;;  %v2860_v57 = vld [vmem:[#allocation24_spill] sm:$0xff]  ;;  %v2221_v30 = vpop.permute.xlu1 %1058  ;;  %v2223_v33 = vpop.permute.xlu0 %1063  ;;  %v2287_v24 = vmul.f32 %v2169_v32, %v2103_v42 }
 0x179   :  { %648 = vst [vmem:[#allocation6 + $0xf0] sm:$0xff] %v584_v21  ;;  %650 = vst [vmem:[#allocation6 + $0x100] sm:$0xff] %v586_v43  ;;  %v610_v15 = vadd.f32 %v2172_v35, %v2859_v12  ;;  %v612_v52 = vadd.f32 %v2175_v34, %v2860_v57  ;;  %v2861_v26 = vld [vmem:[#allocation25_spill] sm:$0xff]  ;;  %v2862_v17 = vld [vmem:[#allocation26_spill] sm:$0xff]  ;;  %v2259_v43 = vmul.f32 %v2169_v32, %v2082_v6 }
 0x17a   :  { %652 = vst [vmem:[#allocation6 + $0x110] sm:$0xff] %v588_v29  ;;  %654 = vst [vmem:[#allocation6 + $0x120] sm:$0xff] %v590_v8  ;;  %v614_v48 = vadd.f32 %v2178_v49, %v2861_v26  ;;  %v616_v39 = vadd.f32 %v2181_v46, %v2862_v17  ;;  %v2865_v35 = vld [vmem:[#allocation62_spill] sm:$0xff]  ;;  %v2866_v49 = vld [vmem:[#allocation61_spill] sm:$0xff]  ;;  %v2267_v29 = vmul.f32 %v2169_v32, %v2090_v9 }
 0x17b   :  { %656 = vst [vmem:[#allocation6 + $0x130] sm:$0xff] %v592_v59  ;;  %658 = vst [vmem:[#allocation6 + $0x140] sm:$0xff] %v594_v40  ;;  %v2227_v34 = vmul.f32 %v2169_v32, %v2865_v35  ;;  %v2231_v10 = vmul.f32 %v2169_v32, %v2866_v49  ;;  %v2867_v46 = vld [vmem:[#allocation63_spill] sm:$0xff]  ;;  %v2868_v53 = vld [vmem:[#allocation64_spill] sm:$0xff]  ;;  %v2275_v8 = vmul.f32 %v2169_v32, %v2094_v7 }
 0x17c   :  { %660 = vst [vmem:[#allocation6 + $0x150] sm:$0xff] %v596_v1  ;;  %662 = vst [vmem:[#allocation6 + $0x160] sm:$0xff] %v598_v31  ;;  %v2235_v44 = vmul.f32 %v2169_v32, %v2867_v46  ;;  %v2239_v61 = vmul.f32 %v2169_v32, %v2868_v53  ;;  %v2869_v5 = vld [vmem:[#allocation65_spill] sm:$0xff]  ;;  %v2870_v56 = vld [vmem:[#allocation66_spill] sm:$0xff]  ;;  %v2283_v59 = vmul.f32 %v2169_v32, %v2101_v63  ;;  %v2321_v38 = vpop.permute.xlu1 %1068 }
 0x17d   :  { %664 = vst [vmem:[#allocation6 + $0x170] sm:$0xff] %v600_v60  ;;  %2863 = vst [vmem:[#allocation9_spill] sm:$0xff] %v2221_v30  ;;  %v2243_v25 = vmul.f32 %v2169_v32, %v2869_v5  ;;  %v2247_v27 = vmul.f32 %v2169_v32, %v2870_v56  ;;  %v2871_v3 = vld [vmem:[#allocation67_spill] sm:$0xff]  ;;  %v2291_v40 = vmul.f32 %v2169_v32, %v2105_v11  ;;  %v2872_v28 = vld [vmem:[#allocation80_spill] sm:$0xff] }
 0x17e   :  { %2864 = vst [vmem:[#allocation10_spill] sm:$0xff] %v2223_v33  ;;  %666 = vst [vmem:[#allocation6 + $0x180] sm:$0xff] %v602_v18  ;;  %v2251_v21 = vmul.f32 %v2169_v32, %v2871_v3  ;;  %v2295_v20 = vmul.f32 %v2169_v32, %v2107_v47  ;;  %v2299_v1 = vmul.f32 %v2169_v32, %v2109_v37  ;;  %v2873_v62 = vld [vmem:[#allocation81_spill] sm:$0xff]  ;;  %v2874_v16 = vld [vmem:[#allocation82_spill] sm:$0xff] }
 0x17f   :  { %668 = vst [vmem:[#allocation6 + $0x190] sm:$0xff] %v604_v41  ;;  %670 = vst [vmem:[#allocation6 + $0x1a0] sm:$0xff] %v606_v51  ;;  %v2303_v31 = vmul.f32 %v2169_v32, %v2872_v28  ;;  %v2307_v60 = vmul.f32 %v2169_v32, %v2873_v62  ;;  %v2311_v18 = vmul.f32 %v2169_v32, %v2874_v16  ;;  %v2875_v13 = vld [vmem:[#allocation83_spill] sm:$0xff]  ;;  %v2876_v45 = vld [vmem:[#allocation84_spill] sm:$0xff] }
 0x180   :  { %672 = vst [vmem:[#allocation6 + $0x1b0] sm:$0xff] %v608_v50  ;;  %674 = vst [vmem:[#allocation6 + $0x1c0] sm:$0xff] %v610_v15  ;;  %v2315_v41 = vmul.f32 %v2169_v32, %v2875_v13  ;;  %v2319_v51 = vmul.f32 %v2169_v32, %v2876_v45  ;;  %v2323_v50 = vpop.permute.xlu0 %1073  ;;  %v2879_v12 = vld [vmem:[#allocation85_spill] sm:$0xff]  ;;  %v2880_v57 = vld [vmem:[#allocation86_spill] sm:$0xff]  ;;  %v2335_v26 = vmul.f32 %v2169_v32, %v2187_v23 }
 0x181   :  { %676 = vst [vmem:[#allocation6 + $0x1d0] sm:$0xff] %v612_v52  ;;  %678 = vst [vmem:[#allocation6 + $0x1e0] sm:$0xff] %v614_v48  ;;  %v2327_v15 = vmul.f32 %v2169_v32, %v2879_v12  ;;  %v2331_v52 = vmul.f32 %v2169_v32, %v2880_v57  ;;  %v2339_v48 = vmul.f32 %v2169_v32, %v2189_v36  ;;  %v2881_v12 = vld [vmem:[#allocation30_spill] sm:$0xff]  ;;  %v2882_v45 = vld [vmem:[#allocation87_spill] sm:$0xff] }
 0x182   :  { %680 = vst [vmem:[#allocation6 + $0x1f0] sm:$0xff] %v616_v39  ;;  %2877 = vst [vmem:[#allocation11_spill] sm:$0xff] %v2321_v38  ;;  %v2343_v17 = vmul.f32 %v2169_v32, %v2221_v30  ;;  %v2347_v39 = vmul.f32 %v2169_v32, %v2223_v33  ;;  %v2351_v57 = vmul.f32 %v2169_v32, %v2321_v38  ;;  %v2883_v13 = vld [vmem:[#allocation29_spill] sm:$0xff]  ;;  %v2884_v16 = vld [vmem:[#allocation32_spill] sm:$0xff] }
 0x183   :  { %2878 = vst [vmem:[#allocation12_spill] sm:$0xff] %v2323_v50  ;;  %v2355_v23 = vmul.f32 %v2169_v32, %v2323_v50  ;;  %v2359_v36 = vmul.f32 %v2882_v45, %v2881_v12  ;;  %v2363_v30 = vmul.f32 %v2882_v45, %v2883_v13  ;;  %v2367_v33 = vmul.f32 %v2882_v45, %v2884_v16  ;;  %v2885_v62 = vld [vmem:[#allocation31_spill] sm:$0xff]  ;;  %v2886_v28 = vld [vmem:[#allocation34_spill] sm:$0xff]  ;;  %v2887_v50 = vld [vmem:[#allocation33_spill] sm:$0xff] }
 0x184   :  { %v2371_v38 = vmul.f32 %v2882_v45, %v2885_v62  ;;  %v2375_v32 = vmul.f32 %v2882_v45, %v2886_v28  ;;  %v2379_v12 = vmul.f32 %v2882_v45, %v2887_v50  ;;  %v2888_v37 = vld [vmem:[#allocation36_spill] sm:$0xff]  ;;  %v2889_v47 = vld [vmem:[#allocation35_spill] sm:$0xff]  ;;  %v2890_v11 = vld [vmem:[#allocation38_spill] sm:$0xff] }
 0x185   :  { %v2383_v13 = vmul.f32 %v2882_v45, %v2888_v37  ;;  %v2387_v16 = vmul.f32 %v2882_v45, %v2889_v47  ;;  %v2391_v62 = vmul.f32 %v2882_v45, %v2890_v11  ;;  %v2891_v42 = vld [vmem:[#allocation37_spill] sm:$0xff]  ;;  %v2892_v63 = vld [vmem:[#allocation40_spill] sm:$0xff]  ;;  %v2893_v2 = vld [vmem:[#allocation39_spill] sm:$0xff] }
 0x186   :  { %v2395_v28 = vmul.f32 %v2882_v45, %v2891_v42  ;;  %v2399_v50 = vmul.f32 %v2882_v45, %v2892_v63  ;;  %v2403_v37 = vmul.f32 %v2882_v45, %v2893_v2  ;;  %v2894_v7 = vld [vmem:[#allocation42_spill] sm:$0xff]  ;;  %v2895_v58 = vld [vmem:[#allocation41_spill] sm:$0xff]  ;;  %v2896_v9 = vld [vmem:[#allocation44_spill] sm:$0xff] }
 0x187   :  { %v2407_v47 = vmul.f32 %v2882_v45, %v2894_v7  ;;  %v2411_v11 = vmul.f32 %v2882_v45, %v2895_v58  ;;  %v2415_v42 = vmul.f32 %v2882_v45, %v2896_v9  ;;  %v2897_v19 = vld [vmem:[#allocation43_spill] sm:$0xff]  ;;  %v2898_v6 = vld [vmem:[#allocation46_spill] sm:$0xff]  ;;  %v2899_v14 = vld [vmem:[#allocation45_spill] sm:$0xff] }
 0x188   :  { %v2419_v63 = vmul.f32 %v2882_v45, %v2897_v19  ;;  %v2423_v2 = vmul.f32 %v2882_v45, %v2898_v6  ;;  %v2427_v7 = vmul.f32 %v2882_v45, %v2899_v14  ;;  %v2901_v3 = vld [vmem:[#allocation48_spill] sm:$0xff]  ;;  %v2903_v56 = vld [vmem:[#allocation47_spill] sm:$0xff]  ;;  %v2905_v5 = vld [vmem:[#allocation50_spill] sm:$0xff] }
 0x189   :  { %v2431_v58 = vmul.f32 %v2882_v45, %v2901_v3  ;;  %v2435_v9 = vmul.f32 %v2882_v45, %v2903_v56  ;;  %v2439_v19 = vmul.f32 %v2882_v45, %v2905_v5  ;;  %v2907_v53 = vld [vmem:[#allocation49_spill] sm:$0xff]  ;;  %v2909_v46 = vld [vmem:[#allocation52_spill] sm:$0xff]  ;;  %v2911_v49 = vld [vmem:[#allocation51_spill] sm:$0xff]  ;;  %v2455_v56 = vmul.f32 %v2882_v45, %v2913_v22 }
 0x18a   :  { %2900 = vst [vmem:[#allocation13_spill] sm:$0xff] %v2427_v7  ;;  %v2443_v6 = vmul.f32 %v2882_v45, %v2907_v53  ;;  %v2447_v14 = vmul.f32 %v2882_v45, %v2909_v46  ;;  %v2451_v3 = vmul.f32 %v2882_v45, %v2911_v49  ;;  %v2915_v35 = vld [vmem:[#allocation53_spill] sm:$0xff] }
 0x18b   :  { %2902 = vst [vmem:[#allocation14_spill] sm:$0xff] %v2431_v58  ;;  %2904 = vst [vmem:[#allocation15_spill] sm:$0xff] %v2435_v9  ;;  %v2459_v5 = vmul.f32 %v2882_v45, %v2915_v35  ;;  %v1461_v58 = vld [vmem:[#allocation3 + $0x230] sm:$0xff] }
 0x18c   :  { %2906 = vst [vmem:[#allocation16_spill] sm:$0xff] %v2439_v19  ;;  %2908 = vst [vmem:[#allocation17_spill] sm:$0xff] %v2443_v6  ;;  %v2917_v19 = vld [vmem:[#allocation56_spill] sm:$0xff]  ;;  %v2919_v6 = vld [vmem:[#allocation55_spill] sm:$0xff] }
 0x18d   :  { %2910 = vst [vmem:[#allocation18_spill] sm:$0xff] %v2447_v14  ;;  %2912 = vst [vmem:[#allocation19_spill] sm:$0xff] %v2451_v3  ;;  %v2463_v53 = vmul.f32 %v2882_v45, %v2917_v19  ;;  %v2467_v46 = vmul.f32 %v2882_v45, %v2919_v6  ;;  %v2921_v14 = vld [vmem:[#allocation58_spill] sm:$0xff]  ;;  %v2923_v3 = vld [vmem:[#allocation57_spill] sm:$0xff] }
 0x18e   :  { %2914 = vst [vmem:[#allocation20_spill] sm:$0xff] %v2455_v56  ;;  %2916 = vst [vmem:[#allocation21_spill] sm:$0xff] %v2459_v5  ;;  %v2471_v49 = vmul.f32 %v2882_v45, %v2921_v14  ;;  %v2475_v22 = vmul.f32 %v2882_v45, %v2923_v3  ;;  %v2925_v56 = vld [vmem:[#allocation60_spill] sm:$0xff]  ;;  %v2927_v5 = vld [vmem:[#allocation59_spill] sm:$0xff]  ;;  %v1146_v3 = vadd.f32 %v1461_v58, %v2239_v61 }
 0x18f   :  { %2918 = vst [vmem:[#allocation22_spill] sm:$0xff] %v2463_v53  ;;  %2920 = vst [vmem:[#allocation23_spill] sm:$0xff] %v2467_v46  ;;  %v2479_v35 = vmul.f32 %v2882_v45, %v2925_v56  ;;  %v2483_v19 = vmul.f32 %v2882_v45, %v2927_v5  ;;  %v1458_v53 = vld [vmem:[#allocation3 + $0x200] sm:$0xff]  ;;  %v1459_v46 = vld [vmem:[#allocation3 + $0x210] sm:$0xff] }
 0x190   :  { %2922 = vst [vmem:[#allocation24_spill] sm:$0xff] %v2471_v49  ;;  %2924 = vst [vmem:[#allocation25_spill] sm:$0xff] %v2475_v22  ;;  %v1140_v6 = vadd.f32 %v1458_v53, %v2227_v34  ;;  %v1142_v9 = vadd.f32 %v1459_v46, %v2231_v10  ;;  %v1460_v14 = vld [vmem:[#allocation3 + $0x220] sm:$0xff]  ;;  %v1467_v46 = vld [vmem:[#allocation3 + $0x290] sm:$0xff] }
 0x191   :  { %2926 = vst [vmem:[#allocation26_spill] sm:$0xff] %v2479_v35  ;;  %2928 = vst [vmem:[#allocation30_spill] sm:$0xff] %v2483_v19  ;;  %v1144_v49 = vadd.f32 %v1460_v14, %v2235_v44  ;;  %v1462_v22 = vld [vmem:[#allocation3 + $0x240] sm:$0xff]  ;;  %v1463_v35 = vld [vmem:[#allocation3 + $0x250] sm:$0xff]  ;;  %v1158_v44 = vadd.f32 %v1467_v46, %v2263_v55 }
 0x192   :  { %v1148_v56 = vadd.f32 %v1462_v22, %v2243_v25  ;;  %v1150_v7 = vadd.f32 %v1463_v35, %v2247_v27  ;;  %v1464_v45 = vld [vmem:[#allocation3 + $0x260] sm:$0xff]  ;;  %v1465_v19 = vld [vmem:[#allocation3 + $0x270] sm:$0xff]  ;;  %1205 = vst [vmem:[#allocation6 + $0x200] sm:$0xff] %v1140_v6  ;;  %1207 = vst [vmem:[#allocation6 + $0x210] sm:$0xff] %v1142_v9 }
 0x193   :  { %v1152_v5 = vadd.f32 %v1464_v45, %v2251_v21  ;;  %v1154_v34 = vadd.f32 %v1465_v19, %v2255_v0  ;;  %v1466_v53 = vld [vmem:[#allocation3 + $0x280] sm:$0xff]  ;;  %v1469_v58 = vld [vmem:[#allocation3 + $0x2b0] sm:$0xff]  ;;  %1209 = vst [vmem:[#allocation6 + $0x220] sm:$0xff] %v1144_v49  ;;  %1211 = vst [vmem:[#allocation6 + $0x230] sm:$0xff] %v1146_v3 }
 0x194   :  { %v1156_v10 = vadd.f32 %v1466_v53, %v2259_v43  ;;  %v1468_v14 = vld [vmem:[#allocation3 + $0x2a0] sm:$0xff]  ;;  %v1162_v25 = vadd.f32 %v1469_v58, %v2271_v4  ;;  %v1471_v0 = vld [vmem:[#allocation3 + $0x2d0] sm:$0xff]  ;;  %1213 = vst [vmem:[#allocation6 + $0x240] sm:$0xff] %v1148_v56  ;;  %1215 = vst [vmem:[#allocation6 + $0x250] sm:$0xff] %v1150_v7 }
 0x195   :  { %v1160_v61 = vadd.f32 %v1468_v14, %v2267_v29  ;;  %v1470_v27 = vld [vmem:[#allocation3 + $0x2c0] sm:$0xff]  ;;  %v1166_v22 = vadd.f32 %v1471_v0, %v2279_v54  ;;  %v1473_v55 = vld [vmem:[#allocation3 + $0x2f0] sm:$0xff]  ;;  %1217 = vst [vmem:[#allocation6 + $0x260] sm:$0xff] %v1152_v5  ;;  %1219 = vst [vmem:[#allocation6 + $0x270] sm:$0xff] %v1154_v34 }
 0x196   :  { %v1164_v21 = vadd.f32 %v1470_v27, %v2275_v8  ;;  %v1472_v43 = vld [vmem:[#allocation3 + $0x2e0] sm:$0xff]  ;;  %v1170_v19 = vadd.f32 %v1473_v55, %v2287_v24  ;;  %v1475_v9 = vld [vmem:[#allocation3 + $0x310] sm:$0xff]  ;;  %1221 = vst [vmem:[#allocation6 + $0x280] sm:$0xff] %v1156_v10  ;;  %1223 = vst [vmem:[#allocation6 + $0x290] sm:$0xff] %v1158_v44 }
 0x197   :  { %v1168_v35 = vadd.f32 %v1472_v43, %v2283_v59  ;;  %v1474_v29 = vld [vmem:[#allocation3 + $0x300] sm:$0xff]  ;;  %v1174_v49 = vadd.f32 %v1475_v9, %v2295_v20  ;;  %v1477_v54 = vld [vmem:[#allocation3 + $0x330] sm:$0xff]  ;;  %1225 = vst [vmem:[#allocation6 + $0x2a0] sm:$0xff] %v1160_v61  ;;  %1227 = vst [vmem:[#allocation6 + $0x2b0] sm:$0xff] %v1162_v25 }
 0x198   :  { %v1172_v4 = vadd.f32 %v1474_v29, %v2291_v40  ;;  %v1476_v8 = vld [vmem:[#allocation3 + $0x320] sm:$0xff]  ;;  %v1178_v3 = vadd.f32 %v1477_v54, %v2303_v31  ;;  %v1479_v7 = vld [vmem:[#allocation3 + $0x350] sm:$0xff]  ;;  %1229 = vst [vmem:[#allocation6 + $0x2c0] sm:$0xff] %v1164_v21  ;;  %1231 = vst [vmem:[#allocation6 + $0x2d0] sm:$0xff] %v1166_v22 }
 0x199   :  { %v1176_v6 = vadd.f32 %v1476_v8, %v2299_v1  ;;  %v1478_v59 = vld [vmem:[#allocation3 + $0x340] sm:$0xff]  ;;  %v1182_v56 = vadd.f32 %v1479_v7, %v2311_v18  ;;  %v1481_v20 = vld [vmem:[#allocation3 + $0x370] sm:$0xff]  ;;  %1233 = vst [vmem:[#allocation6 + $0x2e0] sm:$0xff] %v1168_v35  ;;  %1235 = vst [vmem:[#allocation6 + $0x2f0] sm:$0xff] %v1170_v19 }
 0x19a   :  { %v1180_v24 = vadd.f32 %v1478_v59, %v2307_v60  ;;  %v1480_v40 = vld [vmem:[#allocation3 + $0x360] sm:$0xff]  ;;  %v1186_v5 = vadd.f32 %v1481_v20, %v2319_v51  ;;  %v1483_v34 = vld [vmem:[#allocation3 + $0x390] sm:$0xff]  ;;  %1237 = vst [vmem:[#allocation6 + $0x300] sm:$0xff] %v1172_v4  ;;  %1239 = vst [vmem:[#allocation6 + $0x310] sm:$0xff] %v1174_v49 }
 0x19b   :  { %v1184_v45 = vadd.f32 %v1480_v40, %v2315_v41  ;;  %v1482_v1 = vld [vmem:[#allocation3 + $0x380] sm:$0xff]  ;;  %v1190_v53 = vadd.f32 %v1483_v34, %v2331_v52  ;;  %v1485_v18 = vld [vmem:[#allocation3 + $0x3b0] sm:$0xff]  ;;  %1241 = vst [vmem:[#allocation6 + $0x320] sm:$0xff] %v1176_v6  ;;  %1243 = vst [vmem:[#allocation6 + $0x330] sm:$0xff] %v1178_v3 }
 0x19c   :  { %v1188_v31 = vadd.f32 %v1482_v1, %v2327_v15  ;;  %v1484_v60 = vld [vmem:[#allocation3 + $0x3a0] sm:$0xff]  ;;  %v1194_v46 = vadd.f32 %v1485_v18, %v2339_v48  ;;  %v1487_v44 = vld [vmem:[#allocation3 + $0x3d0] sm:$0xff]  ;;  %v2930_v52 = vld [vmem:[#allocation28_spill] sm:$0xff]  ;;  %1245 = vst [vmem:[#allocation6 + $0x340] sm:$0xff] %v1180_v24 }
 0x19d   :  { %v1192_v10 = vadd.f32 %v1484_v60, %v2335_v26  ;;  %v1486_v41 = vld [vmem:[#allocation3 + $0x3c0] sm:$0xff]  ;;  %v1198_v14 = vadd.f32 %v1487_v44, %v2347_v39  ;;  %v2929_v15 = vld [vmem:[#allocation27_spill] sm:$0xff]  ;;  %v1202_v58 = vadd.f32 %v2355_v23, %v2930_v52  ;;  %1247 = vst [vmem:[#allocation6 + $0x350] sm:$0xff] %v1182_v56  ;;  %1249 = vst [vmem:[#allocation6 + $0x360] sm:$0xff] %v1184_v45 }
 0x19e   :  { %v1196_v51 = vadd.f32 %v1486_v41, %v2343_v17  ;;  %v1200_v61 = vadd.f32 %v2351_v57, %v2929_v15  ;;  %1251 = vst [vmem:[#allocation6 + $0x370] sm:$0xff] %v1186_v5  ;;  %v1488_v26 = vld [vmem:[#allocation3 + $0x8] sm:$0xff]  ;;  %v1489_v25 = vld [vmem:[#allocation3 + $0x18] sm:$0xff]  ;;  %1253 = vst [vmem:[#allocation6 + $0x380] sm:$0xff] %v1188_v31 }
 0x19f   :  { %v555_v48 = vadd.f32 %v1488_v26, %v2359_v36  ;;  %v557_v27 = vadd.f32 %v1489_v25, %v2363_v30  ;;  %v1490_v17 = vld [vmem:[#allocation3 + $0x28] sm:$0xff]  ;;  %v1491_v39 = vld [vmem:[#allocation3 + $0x38] sm:$0xff]  ;;  %1255 = vst [vmem:[#allocation6 + $0x390] sm:$0xff] %v1190_v53  ;;  %1257 = vst [vmem:[#allocation6 + $0x3a0] sm:$0xff] %v1192_v10 }
 0x1a0   :  { %v559_v21 = vadd.f32 %v1490_v17, %v2367_v33  ;;  %v561_v0 = vadd.f32 %v1491_v39, %v2371_v38  ;;  %1259 = vst [vmem:[#allocation6 + $0x3b0] sm:$0xff] %v1194_v46  ;;  %v1492_v23 = vld [vmem:[#allocation3 + $0x48] sm:$0xff]  ;;  %v1493_v22 = vld [vmem:[#allocation3 + $0x58] sm:$0xff]  ;;  %1261 = vst [vmem:[#allocation6 + $0x3c0] sm:$0xff] %v1196_v51 }
 0x1a1   :  { %v563_v57 = vadd.f32 %v1492_v23, %v2375_v32  ;;  %v565_v43 = vadd.f32 %v1493_v22, %v2379_v12  ;;  %v1494_v36 = vld [vmem:[#allocation3 + $0x68] sm:$0xff]  ;;  %v1495_v30 = vld [vmem:[#allocation3 + $0x78] sm:$0xff]  ;;  %1263 = vst [vmem:[#allocation6 + $0x3d0] sm:$0xff] %v1198_v14  ;;  %1265 = vst [vmem:[#allocation6 + $0x3e0] sm:$0xff] %v1200_v61 }
 0x1a2   :  { %v567_v35 = vadd.f32 %v1494_v36, %v2383_v13  ;;  %v569_v55 = vadd.f32 %v1495_v30, %v2387_v16  ;;  %1267 = vst [vmem:[#allocation6 + $0x3f0] sm:$0xff] %v1202_v58  ;;  %v1496_v33 = vld [vmem:[#allocation3 + $0x88] sm:$0xff]  ;;  %v1497_v19 = vld [vmem:[#allocation3 + $0x98] sm:$0xff]  ;;  %619 = vst [vmem:[#allocation6 + $0x8] sm:$0xff] %v555_v48 }
 0x1a3   :  { %v571_v38 = vadd.f32 %v1496_v33, %v2391_v62  ;;  %v573_v29 = vadd.f32 %v1497_v19, %v2395_v28  ;;  %v1498_v32 = vld [vmem:[#allocation3 + $0xa8] sm:$0xff]  ;;  %v1499_v12 = vld [vmem:[#allocation3 + $0xb8] sm:$0xff]  ;;  %621 = vst [vmem:[#allocation6 + $0x18] sm:$0xff] %v557_v27  ;;  %623 = vst [vmem:[#allocation6 + $0x28] sm:$0xff] %v559_v21 }
 0x1a4   :  { %v575_v4 = vadd.f32 %v1498_v32, %v2399_v50  ;;  %v577_v9 = vadd.f32 %v1499_v12, %v2403_v37  ;;  %625 = vst [vmem:[#allocation6 + $0x38] sm:$0xff] %v561_v0  ;;  %v1500_v13 = vld [vmem:[#allocation3 + $0xc8] sm:$0xff]  ;;  %v1501_v49 = vld [vmem:[#allocation3 + $0xd8] sm:$0xff]  ;;  %627 = vst [vmem:[#allocation6 + $0x48] sm:$0xff] %v563_v57 }
 0x1a5   :  { %v579_v16 = vadd.f32 %v1500_v13, %v2407_v47  ;;  %v581_v8 = vadd.f32 %v1501_v49, %v2411_v11  ;;  %v1502_v62 = vld [vmem:[#allocation3 + $0xe8] sm:$0xff]  ;;  %v1503_v28 = vld [vmem:[#allocation3 + $0xf8] sm:$0xff]  ;;  %629 = vst [vmem:[#allocation6 + $0x58] sm:$0xff] %v565_v43  ;;  %631 = vst [vmem:[#allocation6 + $0x68] sm:$0xff] %v567_v35 }
 0x1a6   :  { %v583_v6 = vadd.f32 %v1502_v62, %v2415_v42  ;;  %v585_v54 = vadd.f32 %v1503_v28, %v2419_v63  ;;  %633 = vst [vmem:[#allocation6 + $0x78] sm:$0xff] %v569_v55  ;;  %v1504_v50 = vld [vmem:[#allocation3 + $0x108] sm:$0xff]  ;;  %v1505_v3 = vld [vmem:[#allocation3 + $0x118] sm:$0xff]  ;;  %v2931_v59 = vld [vmem:[#allocation13_spill] sm:$0xff] }
 0x1a7   :  { %v587_v37 = vadd.f32 %v1504_v50, %v2423_v2  ;;  %v589_v24 = vadd.f32 %v1505_v3, %v2931_v59  ;;  %v1506_v47 = vld [vmem:[#allocation3 + $0x128] sm:$0xff]  ;;  %v1507_v11 = vld [vmem:[#allocation3 + $0x138] sm:$0xff]  ;;  %v2933_v40 = vld [vmem:[#allocation15_spill] sm:$0xff]  ;;  %635 = vst [vmem:[#allocation6 + $0x88] sm:$0xff] %v571_v38 }
 0x1a8   :  { %v2932_v7 = vld [vmem:[#allocation14_spill] sm:$0xff]  ;;  %v593_v45 = vadd.f32 %v1507_v11, %v2933_v40  ;;  %637 = vst [vmem:[#allocation6 + $0x98] sm:$0xff] %v573_v29  ;;  %639 = vst [vmem:[#allocation6 + $0xa8] sm:$0xff] %v575_v4  ;;  %v2934_v63 = vld [vmem:[#allocation16_spill] sm:$0xff] }
 0x1a9   :  { %v591_v56 = vadd.f32 %v1506_v47, %v2932_v7  ;;  %641 = vst [vmem:[#allocation6 + $0xb8] sm:$0xff] %v577_v9  ;;  %v1508_v42 = vld [vmem:[#allocation3 + $0x148] sm:$0xff]  ;;  %v1509_v5 = vld [vmem:[#allocation3 + $0x158] sm:$0xff]  ;;  %v2935_v1 = vld [vmem:[#allocation17_spill] sm:$0xff] }
 0x1aa   :  { %v595_v20 = vadd.f32 %v1508_v42, %v2934_v63  ;;  %v597_v31 = vadd.f32 %v1509_v5, %v2935_v1  ;;  %v1510_v2 = vld [vmem:[#allocation3 + $0x168] sm:$0xff]  ;;  %v1511_v60 = vld [vmem:[#allocation3 + $0x178] sm:$0xff]  ;;  %v2937_v10 = vld [vmem:[#allocation19_spill] sm:$0xff]  ;;  %643 = vst [vmem:[#allocation6 + $0xc8] sm:$0xff] %v579_v16 }
 0x1ab   :  { %v2936_v34 = vld [vmem:[#allocation18_spill] sm:$0xff]  ;;  %v601_v18 = vadd.f32 %v1511_v60, %v2937_v10  ;;  %645 = vst [vmem:[#allocation6 + $0xd8] sm:$0xff] %v581_v8  ;;  %647 = vst [vmem:[#allocation6 + $0xe8] sm:$0xff] %v583_v6  ;;  %v2938_v41 = vld [vmem:[#allocation20_spill] sm:$0xff] }
 0x1ac   :  { %v599_v53 = vadd.f32 %v1510_v2, %v2936_v34  ;;  %649 = vst [vmem:[#allocation6 + $0xf8] sm:$0xff] %v585_v54  ;;  %v1512_v46 = vld [vmem:[#allocation3 + $0x188] sm:$0xff]  ;;  %v1513_v44 = vld [vmem:[#allocation3 + $0x198] sm:$0xff]  ;;  %v2939_v14 = vld [vmem:[#allocation21_spill] sm:$0xff] }
 0x1ad   :  { %v603_v51 = vadd.f32 %v1512_v46, %v2938_v41  ;;  %v605_v15 = vadd.f32 %v1513_v44, %v2939_v14  ;;  %v1514_v61 = vld [vmem:[#allocation3 + $0x1a8] sm:$0xff]  ;;  %v1515_v26 = vld [vmem:[#allocation3 + $0x1b8] sm:$0xff]  ;;  %v2941_v48 = vld [vmem:[#allocation23_spill] sm:$0xff]  ;;  %651 = vst [vmem:[#allocation6 + $0x108] sm:$0xff] %v587_v37 }
 0x1ae   :  { %v2940_v52 = vld [vmem:[#allocation22_spill] sm:$0xff]  ;;  %v609_v25 = vadd.f32 %v1515_v26, %v2941_v48  ;;  %653 = vst [vmem:[#allocation6 + $0x118] sm:$0xff] %v589_v24  ;;  %655 = vst [vmem:[#allocation6 + $0x128] sm:$0xff] %v591_v56  ;;  %v2942_v17 = vld [vmem:[#allocation24_spill] sm:$0xff] }
 0x1af   :  { %v607_v58 = vadd.f32 %v1514_v61, %v2940_v52  ;;  %657 = vst [vmem:[#allocation6 + $0x138] sm:$0xff] %v593_v45  ;;  %v1516_v27 = vld [vmem:[#allocation3 + $0x1c8] sm:$0xff]  ;;  %v1517_v39 = vld [vmem:[#allocation3 + $0x1d8] sm:$0xff]  ;;  %v2943_v0 = vld [vmem:[#allocation25_spill] sm:$0xff] }
 0x1b0   :  { %v611_v21 = vadd.f32 %v1516_v27, %v2942_v17  ;;  %v613_v23 = vadd.f32 %v1517_v39, %v2943_v0  ;;  %v1518_v57 = vld [vmem:[#allocation3 + $0x1e8] sm:$0xff]  ;;  %v1519_v36 = vld [vmem:[#allocation3 + $0x1f8] sm:$0xff]  ;;  %659 = vst [vmem:[#allocation6 + $0x148] sm:$0xff] %v595_v20  ;;  %661 = vst [vmem:[#allocation6 + $0x158] sm:$0xff] %v597_v31 }
 0x1b1   :  { %v2944_v22 = vld [vmem:[#allocation26_spill] sm:$0xff]  ;;  %663 = vst [vmem:[#allocation6 + $0x168] sm:$0xff] %v599_v53  ;;  %665 = vst [vmem:[#allocation6 + $0x178] sm:$0xff] %v601_v18  ;;  %v2947_v33 = vld [vmem:[#allocation88_spill] sm:$0xff] }
 0x1b2   :  { %v615_v43 = vadd.f32 %v1518_v57, %v2944_v22  ;;  %v2945_v35 = vld [vmem:[#allocation30_spill] sm:$0xff]  ;;  %667 = vst [vmem:[#allocation6 + $0x188] sm:$0xff] %v603_v51  ;;  %669 = vst [vmem:[#allocation6 + $0x198] sm:$0xff] %v605_v15  ;;  %v2948_v19 = vld [vmem:[#allocation61_spill] sm:$0xff] }
 0x1b3   :  { %v617_v30 = vadd.f32 %v1519_v36, %v2945_v35  ;;  %671 = vst [vmem:[#allocation6 + $0x1a8] sm:$0xff] %v607_v58  ;;  %673 = vst [vmem:[#allocation6 + $0x1b8] sm:$0xff] %v609_v25  ;;  %v2946_v55 = vld [vmem:[#allocation62_spill] sm:$0xff]  ;;  %v1079_v29 = vmul.f32 %v2947_v33, %v2948_v19  ;;  %v2949_v32 = vld [vmem:[#allocation63_spill] sm:$0xff] }
 0x1b4   :  { %v1077_v38 = vmul.f32 %v2947_v33, %v2946_v55  ;;  %v1081_v4 = vmul.f32 %v2947_v33, %v2949_v32  ;;  %v2950_v12 = vld [vmem:[#allocation64_spill] sm:$0xff]  ;;  %675 = vst [vmem:[#allocation6 + $0x1c8] sm:$0xff] %v611_v21  ;;  %677 = vst [vmem:[#allocation6 + $0x1d8] sm:$0xff] %v613_v23  ;;  %v2951_v13 = vld [vmem:[#allocation65_spill] sm:$0xff] }
 0x1b5   :  { %v1083_v9 = vmul.f32 %v2947_v33, %v2950_v12  ;;  %679 = vst [vmem:[#allocation6 + $0x1e8] sm:$0xff] %v615_v43  ;;  %681 = vst [vmem:[#allocation6 + $0x1f8] sm:$0xff] %v617_v30  ;;  %v1085_v16 = vmul.f32 %v2947_v33, %v2951_v13  ;;  %v2952_v49 = vld [vmem:[#allocation66_spill] sm:$0xff]  ;;  %v2953_v62 = vld [vmem:[#allocation67_spill] sm:$0xff] }
 0x1b6   :  { %v1087_v8 = vmul.f32 %v2947_v33, %v2952_v49  ;;  %v1089_v6 = vmul.f32 %v2947_v33, %v2953_v62  ;;  %v2954_v28 = vld [vmem:[#allocation68_spill] sm:$0xff]  ;;  %v2955_v50 = vld [vmem:[#allocation69_spill] sm:$0xff]  ;;  %v2956_v3 = vld [vmem:[#allocation70_spill] sm:$0xff] }
 0x1b7   :  { %v1091_v54 = vmul.f32 %v2947_v33, %v2954_v28  ;;  %v1093_v37 = vmul.f32 %v2947_v33, %v2955_v50  ;;  %v1095_v59 = vmul.f32 %v2947_v33, %v2956_v3  ;;  %v2957_v24 = vld [vmem:[#allocation71_spill] sm:$0xff]  ;;  %v2958_v7 = vld [vmem:[#allocation72_spill] sm:$0xff]  ;;  %v2959_v11 = vld [vmem:[#allocation73_spill] sm:$0xff] }
 0x1b8   :  { %v1097_v47 = vmul.f32 %v2947_v33, %v2957_v24  ;;  %v1099_v56 = vmul.f32 %v2947_v33, %v2958_v7  ;;  %v1101_v40 = vmul.f32 %v2947_v33, %v2959_v11  ;;  %v2960_v45 = vld [vmem:[#allocation74_spill] sm:$0xff]  ;;  %v2961_v63 = vld [vmem:[#allocation75_spill] sm:$0xff]  ;;  %v2962_v5 = vld [vmem:[#allocation76_spill] sm:$0xff] }
 0x1b9   :  { %v1103_v42 = vmul.f32 %v2947_v33, %v2960_v45  ;;  %v1105_v20 = vmul.f32 %v2947_v33, %v2961_v63  ;;  %v1107_v1 = vmul.f32 %v2947_v33, %v2962_v5  ;;  %v2963_v31 = vld [vmem:[#allocation77_spill] sm:$0xff]  ;;  %v2964_v34 = vld [vmem:[#allocation78_spill] sm:$0xff]  ;;  %v2965_v60 = vld [vmem:[#allocation79_spill] sm:$0xff] }
 0x1ba   :  { %v1109_v2 = vmul.f32 %v2947_v33, %v2963_v31  ;;  %v1111_v53 = vmul.f32 %v2947_v33, %v2964_v34  ;;  %v1113_v10 = vmul.f32 %v2947_v33, %v2965_v60  ;;  %v2966_v18 = vld [vmem:[#allocation80_spill] sm:$0xff]  ;;  %v2967_v41 = vld [vmem:[#allocation81_spill] sm:$0xff]  ;;  %v2968_v44 = vld [vmem:[#allocation82_spill] sm:$0xff] }
 0x1bb   :  { %v1115_v46 = vmul.f32 %v2947_v33, %v2966_v18  ;;  %v2593_v51 = vmul.f32 %v2947_v33, %v2967_v41  ;;  %v2597_v14 = vmul.f32 %v2947_v33, %v2968_v44  ;;  %v2969_v15 = vld [vmem:[#allocation83_spill] sm:$0xff]  ;;  %v2970_v52 = vld [vmem:[#allocation84_spill] sm:$0xff]  ;;  %v2971_v26 = vld [vmem:[#allocation85_spill] sm:$0xff] }
 0x1bc   :  { %v2601_v61 = vmul.f32 %v2947_v33, %v2969_v15  ;;  %v2605_v58 = vmul.f32 %v2947_v33, %v2970_v52  ;;  %v2609_v48 = vmul.f32 %v2947_v33, %v2971_v26  ;;  %v2972_v25 = vld [vmem:[#allocation86_spill] sm:$0xff]  ;;  %v2973_v17 = vld [vmem:[#allocation89_spill] sm:$0xff]  ;;  %v2977_v36 = vld [vmem:[#allocation11_spill] sm:$0xff] }
 0x1bd   :  { %v2613_v27 = vmul.f32 %v2947_v33, %v2972_v25  ;;  %v2617_v21 = vmul.f32 %v2947_v33, %v2973_v17  ;;  %v2974_v39 = vld [vmem:[#allocation90_spill] sm:$0xff]  ;;  %v2975_v23 = vld [vmem:[#allocation9_spill] sm:$0xff]  ;;  %v2633_v35 = vmul.f32 %v2947_v33, %v2977_v36  ;;  %v2978_v30 = vld [vmem:[#allocation12_spill] sm:$0xff] }
 0x1be   :  { %v2621_v0 = vmul.f32 %v2947_v33, %v2974_v39  ;;  %v2625_v57 = vmul.f32 %v2947_v33, %v2975_v23  ;;  %v2976_v22 = vld [vmem:[#allocation10_spill] sm:$0xff]  ;;  %v2637_v55 = vmul.f32 %v2947_v33, %v2978_v30  ;;  %v1521_v12 = vld [vmem:[#allocation3 + $0x218] sm:$0xff] }
 0x1bf   :  { %v2629_v43 = vmul.f32 %v2947_v33, %v2976_v22  ;;  %v1520_v19 = vld [vmem:[#allocation3 + $0x208] sm:$0xff]  ;;  %v1143_v13 = vadd.f32 %v1521_v12, %v1079_v29  ;;  %v1523_v28 = vld [vmem:[#allocation3 + $0x238] sm:$0xff] }
 0x1c0   :  { %v1141_v32 = vadd.f32 %v1520_v19, %v1077_v38  ;;  %v1522_v49 = vld [vmem:[#allocation3 + $0x228] sm:$0xff]  ;;  %v1147_v50 = vadd.f32 %v1523_v28, %v1083_v9  ;;  %v1525_v7 = vld [vmem:[#allocation3 + $0x258] sm:$0xff] }
 0x1c1   :  { %v1145_v62 = vadd.f32 %v1522_v49, %v1081_v4  ;;  %v1524_v3 = vld [vmem:[#allocation3 + $0x248] sm:$0xff]  ;;  %v1151_v11 = vadd.f32 %v1525_v7, %v1087_v8  ;;  %v1527_v5 = vld [vmem:[#allocation3 + $0x278] sm:$0xff]  ;;  %1208 = vst [vmem:[#allocation6 + $0x218] sm:$0xff] %v1143_v13 }
 0x1c2   :  { %v1149_v24 = vadd.f32 %v1524_v3, %v1085_v16  ;;  %v1526_v45 = vld [vmem:[#allocation3 + $0x268] sm:$0xff]  ;;  %v1155_v31 = vadd.f32 %v1527_v5, %v1091_v54  ;;  %v1529_v33 = vld [vmem:[#allocation3 + $0x298] sm:$0xff]  ;;  %1206 = vst [vmem:[#allocation6 + $0x208] sm:$0xff] %v1141_v32  ;;  %1212 = vst [vmem:[#allocation6 + $0x238] sm:$0xff] %v1147_v50 }
 0x1c3   :  { %v1153_v63 = vadd.f32 %v1526_v45, %v1089_v6  ;;  %v1528_v34 = vld [vmem:[#allocation3 + $0x288] sm:$0xff]  ;;  %v1159_v18 = vadd.f32 %v1529_v33, %v1095_v59  ;;  %v1531_v44 = vld [vmem:[#allocation3 + $0x2b8] sm:$0xff]  ;;  %1210 = vst [vmem:[#allocation6 + $0x228] sm:$0xff] %v1145_v62  ;;  %1216 = vst [vmem:[#allocation6 + $0x258] sm:$0xff] %v1151_v11 }
 0x1c4   :  { %v1157_v60 = vadd.f32 %v1528_v34, %v1093_v37  ;;  %v1530_v41 = vld [vmem:[#allocation3 + $0x2a8] sm:$0xff]  ;;  %v1163_v29 = vadd.f32 %v1531_v44, %v1099_v56  ;;  %v1533_v16 = vld [vmem:[#allocation3 + $0x2d8] sm:$0xff]  ;;  %1214 = vst [vmem:[#allocation6 + $0x248] sm:$0xff] %v1149_v24  ;;  %1220 = vst [vmem:[#allocation6 + $0x278] sm:$0xff] %v1155_v31 }
 0x1c5   :  { %v1161_v38 = vadd.f32 %v1530_v41, %v1097_v47  ;;  %v1532_v4 = vld [vmem:[#allocation3 + $0x2c8] sm:$0xff]  ;;  %v1167_v8 = vadd.f32 %v1533_v16, %v1103_v42  ;;  %v1535_v52 = vld [vmem:[#allocation3 + $0x2f8] sm:$0xff]  ;;  %1218 = vst [vmem:[#allocation6 + $0x268] sm:$0xff] %v1153_v63  ;;  %1224 = vst [vmem:[#allocation6 + $0x298] sm:$0xff] %v1159_v18 }
 0x1c6   :  { %v1165_v9 = vadd.f32 %v1532_v4, %v1101_v40  ;;  %v1534_v15 = vld [vmem:[#allocation3 + $0x2e8] sm:$0xff]  ;;  %v1171_v54 = vadd.f32 %v1535_v52, %v1107_v1  ;;  %v1537_v47 = vld [vmem:[#allocation3 + $0x318] sm:$0xff]  ;;  %1222 = vst [vmem:[#allocation6 + $0x288] sm:$0xff] %v1157_v60  ;;  %1228 = vst [vmem:[#allocation6 + $0x2b8] sm:$0xff] %v1163_v29 }
 0x1c7   :  { %v1169_v6 = vadd.f32 %v1534_v15, %v1105_v20  ;;  %v1536_v37 = vld [vmem:[#allocation3 + $0x308] sm:$0xff]  ;;  %v1175_v56 = vadd.f32 %v1537_v47, %v1111_v53  ;;  %v1539_v17 = vld [vmem:[#allocation3 + $0x338] sm:$0xff]  ;;  %1226 = vst [vmem:[#allocation6 + $0x2a8] sm:$0xff] %v1161_v38  ;;  %1232 = vst [vmem:[#allocation6 + $0x2d8] sm:$0xff] %v1167_v8 }
 0x1c8   :  { %v1173_v59 = vadd.f32 %v1536_v37, %v1109_v2  ;;  %v1538_v26 = vld [vmem:[#allocation3 + $0x328] sm:$0xff]  ;;  %v1179_v39 = vadd.f32 %v1539_v17, %v1115_v46  ;;  %v1541_v20 = vld [vmem:[#allocation3 + $0x358] sm:$0xff]  ;;  %1230 = vst [vmem:[#allocation6 + $0x2c8] sm:$0xff] %v1165_v9  ;;  %1236 = vst [vmem:[#allocation6 + $0x2f8] sm:$0xff] %v1171_v54 }
 0x1c9   :  { %v1177_v25 = vadd.f32 %v1538_v26, %v1113_v10  ;;  %v1540_v40 = vld [vmem:[#allocation3 + $0x348] sm:$0xff]  ;;  %v1183_v1 = vadd.f32 %v1541_v20, %v2597_v14  ;;  %v1543_v23 = vld [vmem:[#allocation3 + $0x378] sm:$0xff]  ;;  %1234 = vst [vmem:[#allocation6 + $0x2e8] sm:$0xff] %v1169_v6  ;;  %1240 = vst [vmem:[#allocation6 + $0x318] sm:$0xff] %v1175_v56 }
 0x1ca   :  { %v1181_v42 = vadd.f32 %v1540_v40, %v2593_v51  ;;  %v1542_v2 = vld [vmem:[#allocation3 + $0x368] sm:$0xff]  ;;  %v1187_v10 = vadd.f32 %v1543_v23, %v2605_v58  ;;  %v1545_v36 = vld [vmem:[#allocation3 + $0x398] sm:$0xff]  ;;  %1238 = vst [vmem:[#allocation6 + $0x308] sm:$0xff] %v1173_v59  ;;  %1244 = vst [vmem:[#allocation6 + $0x338] sm:$0xff] %v1179_v39 }
 0x1cb   :  { %v1185_v53 = vadd.f32 %v1542_v2, %v2601_v61  ;;  %v1544_v46 = vld [vmem:[#allocation3 + $0x388] sm:$0xff]  ;;  %v1191_v30 = vadd.f32 %v1545_v36, %v2613_v27  ;;  %v1547_v14 = vld [vmem:[#allocation3 + $0x3b8] sm:$0xff]  ;;  %1242 = vst [vmem:[#allocation6 + $0x328] sm:$0xff] %v1177_v25  ;;  %1248 = vst [vmem:[#allocation6 + $0x358] sm:$0xff] %v1183_v1 }
 0x1cc   :  { %v1189_v22 = vadd.f32 %v1544_v46, %v2609_v48  ;;  %v1546_v51 = vld [vmem:[#allocation3 + $0x3a8] sm:$0xff]  ;;  %v1195_v32 = vadd.f32 %v1547_v14, %v2621_v0  ;;  %v1549_v12 = vld [vmem:[#allocation3 + $0x3d8] sm:$0xff]  ;;  %1246 = vst [vmem:[#allocation6 + $0x348] sm:$0xff] %v1181_v42  ;;  %1252 = vst [vmem:[#allocation6 + $0x378] sm:$0xff] %v1187_v10 }
 0x1cd   :  { %v1193_v19 = vadd.f32 %v1546_v51, %v2617_v21  ;;  %v1548_v61 = vld [vmem:[#allocation3 + $0x3c8] sm:$0xff]  ;;  %v1199_v48 = vadd.f32 %v1549_v12, %v2629_v43  ;;  %v1551_v49 = vld [vmem:[#allocation3 + $0x3f8] sm:$0xff]  ;;  %1250 = vst [vmem:[#allocation6 + $0x368] sm:$0xff] %v1185_v53  ;;  %1256 = vst [vmem:[#allocation6 + $0x398] sm:$0xff] %v1191_v30 }
 0x1ce   :  { %v1197_v58 = vadd.f32 %v1548_v61, %v2625_v57  ;;  %v1550_v13 = vld [vmem:[#allocation3 + $0x3e8] sm:$0xff]  ;;  %v1203_v21 = vadd.f32 %v1551_v49, %v2637_v55  ;;  %1254 = vst [vmem:[#allocation6 + $0x388] sm:$0xff] %v1189_v22  ;;  %1260 = vst [vmem:[#allocation6 + $0x3b8] sm:$0xff] %v1195_v32 }
 0x1cf   :  { %v1201_v27 = vadd.f32 %v1550_v13, %v2633_v35  ;;  %1258 = vst [vmem:[#allocation6 + $0x3a8] sm:$0xff] %v1193_v19  ;;  %1264 = vst [vmem:[#allocation6 + $0x3d8] sm:$0xff] %v1199_v48 }
 0x1d0   :  { %1262 = vst [vmem:[#allocation6 + $0x3c8] sm:$0xff] %v1197_v58  ;;  %1268 = vst [vmem:[#allocation6 + $0x3f8] sm:$0xff] %v1203_v21 }
 0x1d1   :  { %1266 = vst [vmem:[#allocation6 + $0x3e8] sm:$0xff] %v1201_v27 }
 0x1d2   :  { %1585 = shalt.err (!%p1582_p12)
}
 0x1d3   :  { %s1586_s11 = scalar_lea.hbm %s2675_s6, 16384 }
 0x1d4   :  { %p1587_p13 = scmp.ne.s32.totalorder %s2675_s6, %s1586_s11  ;;  %p1590_p0 = scmp.lt.u32.totalorder %s1586_s11, %s2675_s6 }
 0x1d6   :  { %p1592_p1 = pnand %p1590_p0, %p1587_p13 }
 0x1d8   :  { %1595 = shalt.err (!%p1592_p1)
}
 0x1d9   :  { %1280 = dma.vmem_to_hbm [thread:$0]  %s1275_s29, 16384, %s2675_s6, [#allocation5], %s1601_s7, %s1601_s7, %s1602_s8  }
 0x1da   :  { %1598 = dma.done.wait [#allocation5], 16384  }
 0x1db   :  { %1599 = vsyncadd [#allocation5], 4294950912 }
 0x1dc   :  { %1284 = vsyncpa [#allocation4], 1 }
 0x1dd   :  { %1285 = vsyncpa [#allocation5], 1 }

</bundles_post_ra>
